<compile_context>
chip_gen: v7x
topology: tpu7x:2x2x1
jax: 0.10.0
libtpu: 0.0.40
codegen_flags: <defaults>
</compile_context>

<pallas_src>
import jax
import jax.numpy as jnp
from jax import lax
from jax.experimental import pallas as pl
from jax.experimental.pallas import tpu as pltpu

_VMEM_LIMIT = 32 * 1024 * 1024   # safe scoped-VMEM limit on v5e / v6e / v7x


# --------------------------- generic tiled matmul ----------------------------
def _matmul_kernel(a_ref, b_ref, o_ref, acc_ref):
    @pl.when(pl.program_id(2) == 0)
    def _():
        acc_ref[...] = jnp.zeros_like(acc_ref)

    acc_ref[...] += jnp.dot(a_ref[...], b_ref[...],
                            preferred_element_type=jnp.float32)

    @pl.when(pl.program_id(2) == pl.num_programs(2) - 1)
    def _():
        o_ref[...] = acc_ref[...].astype(o_ref.dtype)


def tiled_matmul(a, b, *, tm=128, tn=128, tk=256, out_dtype=jnp.float32):
    m, k = a.shape
    k2, n = b.shape
    assert k == k2
    tm, tn, tk = min(tm, m), min(tn, n), min(tk, k)
    assert m % tm == 0 and n % tn == 0 and k % tk == 0
    return pl.pallas_call(
        _matmul_kernel,
        out_shape=jax.ShapeDtypeStruct((m, n), out_dtype),
        grid_spec=pltpu.PrefetchScalarGridSpec(
            num_scalar_prefetch=0,
            grid=(m // tm, n // tn, k // tk),
            in_specs=[pl.BlockSpec((tm, tk), lambda i, j, l: (i, l)),
                      pl.BlockSpec((tk, tn), lambda i, j, l: (l, j))],
            out_specs=pl.BlockSpec((tm, tn), lambda i, j, l: (i, j)),
            scratch_shapes=[pltpu.VMEM((tm, tn), jnp.float32)]),
        compiler_params=pltpu.CompilerParams(
            dimension_semantics=("parallel", "parallel", "arbitrary"),
            vmem_limit_bytes=_VMEM_LIMIT),
    )(a, b)


# ----------------------- diag(A@A) as a lane-dense row -----------------------
def _diag_kernel(a2_ref, out_ref):
    i = pl.program_id(0)

    @pl.when(i == 0)
    def _():
        out_ref[...] = jnp.zeros_like(out_ref)

    tile = a2_ref[...]                                      # (tm, N)
    tm, n = tile.shape
    row = lax.broadcasted_iota(jnp.int32, (tm, n), 0)
    col = lax.broadcasted_iota(jnp.int32, (tm, n), 1)
    mask = col == (row + i * tm)                            # picks A2[r, r]
    out_ref[...] += jnp.sum(jnp.where(mask, tile, 0.0), axis=0, keepdims=True)


def diag_of(a2, *, tm=128):
    n = a2.shape[0]
    tm = min(tm, n)
    assert n % tm == 0
    return pl.pallas_call(
        _diag_kernel,
        out_shape=jax.ShapeDtypeStruct((1, n), jnp.float32),
        grid_spec=pltpu.PrefetchScalarGridSpec(
            num_scalar_prefetch=0,
            grid=(n // tm,),
            in_specs=[pl.BlockSpec((tm, n), lambda i: (i, 0))],
            out_specs=pl.BlockSpec((1, n), lambda i: (0, 0))),
        compiler_params=pltpu.CompilerParams(
            dimension_semantics=("arbitrary",),
            vmem_limit_bytes=_VMEM_LIMIT),
    )(a2)


# --------------- row-tiled Gamma + L2-normalize + MLP (SW head) --------------
def _gamma_mlp_kernel(a3_ref, a_ref, dcol_ref, drow_ref,
                      w1_ref, b1_ref, w2_ref, b2_ref, out_ref):
    part1 = a3_ref[...] * a_ref[...]                        # (tm, N)

    # reciprocal-multiply instead of two full N^2 divides (EUP relief)
    inv_dc = pl.reciprocal(dcol_ref[...])                   # (tm, 1)
    inv_dr = pl.reciprocal(drow_ref[...])                   # (1, N)
    g = part1 * inv_dc * inv_dr

    # torch.nan_to_num: nan -> 0, +/-inf -> +/-max_float (keep AFTER multiply)
    maxf = jnp.float32(jnp.finfo(jnp.float32).max)
    g = jnp.where(jnp.isnan(g), 0.0, g)
    g = jnp.clip(g, -maxf, maxf)

    # F.normalize(p=2, dim=1) via rsqrt of the clamped squared norm
    sumsq = jnp.sum(g * g, axis=1, keepdims=True)
    g = g * lax.rsqrt(jnp.maximum(sumsq, 1e-24))

    # SW MLP: Linear -> Tanh -> Linear (hidden zero-padded to 128 lanes, exact)
    h1 = jnp.tanh(jnp.dot(g, w1_ref[...],
                          preferred_element_type=jnp.float32) + b1_ref[...])
    out_ref[...] = (jnp.dot(h1, w2_ref[...],
                            preferred_element_type=jnp.float32) + b2_ref[...])


def gamma_mlp(a3, adj, diag_col, diag_row, w1p, b1p, w2p, b2, *, tm=128):
    n = adj.shape[0]
    h = w1p.shape[1]
    d_out = w2p.shape[1]
    tm = min(tm, n)
    assert n % tm == 0
    return pl.pallas_call(
        _gamma_mlp_kernel,
        out_shape=jax.ShapeDtypeStruct((n, d_out), jnp.float32),
        grid_spec=pltpu.PrefetchScalarGridSpec(
            num_scalar_prefetch=0,
            grid=(n // tm,),
            in_specs=[pl.BlockSpec((tm, n), lambda i: (i, 0)),      # A^3 rows
                      pl.BlockSpec((tm, n), lambda i: (i, 0)),      # A rows
                      pl.BlockSpec((tm, 1), lambda i: (i, 0)),      # diag slice
                      pl.BlockSpec((1, n), lambda i: (0, 0)),       # full diag
                      pl.BlockSpec((n, h), lambda i: (0, 0)),
                      pl.BlockSpec((1, h), lambda i: (0, 0)),
                      pl.BlockSpec((h, d_out), lambda i: (0, 0)),
                      pl.BlockSpec((1, d_out), lambda i: (0, 0))],
            out_specs=pl.BlockSpec((tm, d_out), lambda i: (i, 0))),
        compiler_params=pltpu.CompilerParams(
            dimension_semantics=("parallel",),
            vmem_limit_bytes=_VMEM_LIMIT),
    )(a3, adj, diag_col, diag_row, w1p, b1p, w2p, b2)


def sw_embedding(adj, w1p, b1p, w2p, b2, *, tm=128):
    """Structure_Weighted_Embedding: Gamma = (A@A@A * A)/(diag(A@A) outer), then MLP."""
    n = adj.shape[0]
    adj_bf16 = adj.astype(jnp.bfloat16)          # 0/1-valued -> exact in bf16
    a2 = tiled_matmul(adj_bf16, adj_bf16)        # A@A, f32 accumulate
    a3 = tiled_matmul(a2, adj)                   # (A@A)@A, f32 (A2 may exceed bf16 ints)
    diag_row = diag_of(a2, tm=tm)                # (1, N) lane-dense, computed once
    diag_col = diag_row.reshape(n, 1)            # tiny N-element transpose (XLA glue)
    return gamma_mlp(a3, adj, diag_col, diag_row, w1p, b1p, w2p, b2, tm=tm)


# ------------------- skip-gram (MetaPath2Vec) loss kernel --------------------
def _skipgram_kernel(u_ref, v_ref, neg_ref, out_ref):
    i = pl.program_id(0)

    @pl.when(i == 0)
    def _():
        out_ref[...] = jnp.zeros_like(out_ref)

    u = u_ref[...]                                          # (tb, D)
    v = v_ref[...]                                          # (tb, D)
    neg = neg_ref[...]                                      # (tb, K, D)

    def softplus(x):                                        # stable log(1+exp(x))
        return jnp.maximum(x, 0.0) + jnp.log(1.0 + jnp.exp(-jnp.abs(x)))

    pos = jnp.sum(u * v, axis=-1, keepdims=True)            # (tb, 1)
    pos = jnp.clip(pos, -10.0, 10.0)
    pos_loss = softplus(-pos)                               # -logsigmoid(score)

    neg_s = jnp.sum(neg * u[:, None, :], axis=-1)           # (tb, K)  (bmm equiv.)
    neg_s = jnp.clip(neg_s, -10.0, 10.0)
    neg_loss = jnp.sum(softplus(neg_s), axis=-1, keepdims=True)   # (tb, 1)

    out_ref[...] += jnp.sum(pos_loss + neg_loss, axis=0, keepdims=True)


def skipgram_loss(emb_u, emb_v, emb_neg, *, tb=32):
    b, d = emb_u.shape
    k = emb_neg.shape[1]
    tb = min(tb, b)
    assert b % tb == 0
    total = pl.pallas_call(
        _skipgram_kernel,
        out_shape=jax.ShapeDtypeStruct((1, 1), jnp.float32),
        grid_spec=pltpu.PrefetchScalarGridSpec(
            num_scalar_prefetch=0,
            grid=(b // tb,),
            in_specs=[pl.BlockSpec((tb, d), lambda i: (i, 0)),
                      pl.BlockSpec((tb, d), lambda i: (i, 0)),
                      pl.BlockSpec((tb, k, d), lambda i: (i, 0, 0))],
            out_specs=pl.BlockSpec((1, 1), lambda i: (0, 0))),
        compiler_params=pltpu.CompilerParams(
            dimension_semantics=("arbitrary",),
            vmem_limit_bytes=_VMEM_LIMIT),
    )(emb_u, emb_v, emb_neg)
    return total[0, 0] / b                                  # mean over batch


# ------------------ HeteroDotPredictor (pos+neg fused, lane-dense) -----------
def _edge_dot_kernel(un_ref, vn_ref, us_ref, vs_ref, out_ref):
    # edges live in lanes, feature dim in sublanes -> lane-dense (1, te) store
    out_ref[...] = (jnp.sum(un_ref[...] * vn_ref[...], axis=0, keepdims=True) +
                    jnp.sum(us_ref[...] * vs_ref[...], axis=0, keepdims=True))


def fused_edge_dot(un, vn, us, vs, *, te=128):
    d, e = un.shape
    ds = us.shape[0]
    assert e % te == 0
    return pl.pallas_call(
        _edge_dot_kernel,
        out_shape=jax.ShapeDtypeStruct((1, e), jnp.float32),
        grid_spec=pltpu.PrefetchScalarGridSpec(
            num_scalar_prefetch=0,
            grid=(e // te,),
            in_specs=[pl.BlockSpec((d, te), lambda j: (0, j)),
                      pl.BlockSpec((d, te), lambda j: (0, j)),
                      pl.BlockSpec((ds, te), lambda j: (0, j)),
                      pl.BlockSpec((ds, te), lambda j: (0, j))],
            out_specs=pl.BlockSpec((1, te), lambda j: (0, j))),
        compiler_params=pltpu.CompilerParams(
            dimension_semantics=("parallel",),
            vmem_limit_bytes=_VMEM_LIMIT),
    )(un, vn, us, vs)


# ------------------------------- model wrapper -------------------------------
class SWMetaPath2Vec:
    """JAX/Pallas re-implementation of SW_MetaPath2Vec.forward."""

    def __init__(self, key, n_src, n_dst, emb_dim=128, hidden=32):
        n = n_src + n_dst
        k = jax.random.split(key, 4)
        # MetaPath2Vec embedding tables (node / context)
        self.node_embed = jax.random.normal(k[0], (n, emb_dim), jnp.float32) * 0.1
        self.ctx_embed = jax.random.normal(k[1], (n, emb_dim), jnp.float32) * 0.1
        # SW MLP: Linear(N, hidden) -> Tanh -> Linear(hidden, emb_dim)
        w1 = jax.random.normal(k[2], (n, hidden), jnp.float32) / jnp.sqrt(n)
        w2 = jax.random.normal(k[3], (hidden, emb_dim), jnp.float32) / jnp.sqrt(hidden)
        # zero-pad hidden dim to a multiple of 128 lanes (mathematically exact)
        hp = ((hidden + 127) // 128) * 128
        self.w1p = jnp.zeros((n, hp), jnp.float32).at[:, :hidden].set(w1)
        self.b1p = jnp.zeros((1, hp), jnp.float32)
        self.w2p = jnp.zeros((hp, emb_dim), jnp.float32).at[:hidden, :].set(w2)
        self.b2 = jnp.zeros((1, emb_dim), jnp.float32)
        self.n_src, self.n_dst = n_src, n_dst

    def __call__(self, pos_u, pos_v, neg_v, pos_edges, neg_edges, adj):
        # --- mp2v skip-gram loss (gathers are glue, loss math in kernel) ---
        emb_u = self.node_embed[pos_u]                       # (B, D)
        emb_v = self.ctx_embed[pos_v]                        # (B, D)
        emb_neg = self.ctx_embed[neg_v]                      # (B, K, D)
        loss = skipgram_loss(emb_u, emb_v, emb_neg)

        # --- structure-weighted embedding (tiled Gamma + MLP kernels) ---
        sw_h = sw_embedding(adj, self.w1p, self.b1p, self.w2p, self.b2)  # (N, D)

        # --- HeteroDotPredictor on positive / negative edge graphs ---
        # h = [node_embed | sw_h]; u.v on the concat == u.v(node_embed rows)
        #                                             + u.v(sw_h rows),
        # so the (N, 2D) concat is never materialised.
        e_pos = pos_edges[0].shape[0]
        e_neg = neg_edges[0].shape[0]
        u_idx = jnp.concatenate([pos_edges[0], neg_edges[0]])
        v_idx = jnp.concatenate([pos_edges[1], neg_edges[1]]) + self.n_src
        e_tot = e_pos + e_neg
        e_pad = ((e_tot + 127) // 128) * 128
        pad = e_pad - e_tot
        if pad:
            u_idx = jnp.concatenate([u_idx, jnp.zeros((pad,), u_idx.dtype)])
            v_idx = jnp.concatenate([v_idx, jnp.zeros((pad,), v_idx.dtype)])

        # TODO(synk): per-edge row gather stays in XLA glue; an in-kernel gather
        #             would need PrefetchScalarGridSpec + pl.Element index maps.
        un = jnp.take(self.node_embed, u_idx, axis=0).T      # (D, E_pad)
        vn = jnp.take(self.node_embed, v_idx, axis=0).T
        us = jnp.take(sw_h, u_idx, axis=0).T                 # (D, E_pad)
        vs = jnp.take(sw_h, v_idx, axis=0).T

        scores = fused_edge_dot(un, vn, us, vs)              # (1, E_pad) lane-dense
        pos_score = scores[0, :e_pos].reshape(e_pos, 1)
        neg_score = scores[0, e_pos:e_tot].reshape(e_neg, 1)
        return loss, pos_score, neg_score


# ------------------------------------ main ------------------------------------
if __name__ == "__main__":
    key = jax.random.PRNGKey(0)
    n_src, n_dst = 128, 128           # nodes of etype[0] / etype[2]
    N = n_src + n_dst                 # homogeneous node count (= feat_in of SW)
    emb_dim, hidden = 128, 32
    B, K = 128, 4                     # walk pairs / negatives per pair
    E_pos, E_neg = 96, 96             # edges of pos_hg / neg_hg

    ks = jax.random.split(key, 10)
    model = SWMetaPath2Vec(ks[0], n_src, n_dst, emb_dim, hidden)

    pos_u = jax.random.randint(ks[1], (B,), 0, N)
    pos_v = jax.random.randint(ks[2], (B,), 0, N)
    neg_v = jax.random.randint(ks[3], (B, K), 0, N)

    # dense homogeneous adjacency of the [etype, asetype] subgraph:
    # bipartite block + its transpose (reverse edges)
    bip = (jax.random.uniform(ks[4], (n_src, n_dst)) < 0.05).astype(jnp.float32)
    adj = jnp.zeros((N, N), jnp.float32)
    adj = adj.at[:n_src, n_src:].set(bip)
    adj = adj.at[n_src:, :n_src].set(bip.T)

    pos_edges = (jax.random.randint(ks[5], (E_pos,), 0, n_src),
                 jax.random.randint(ks[6], (E_pos,), 0, n_dst))
    neg_edges = (jax.random.randint(ks[7], (E_neg,), 0, n_src),
                 jax.random.randint(ks[8], (E_neg,), 0, n_dst))

    loss, pos_score, neg_score = model(pos_u, pos_v, neg_v,
                                       pos_edges, neg_edges, adj)
    jax.block_until_ready((loss, pos_score, neg_score))

    assert loss.shape == ()
    assert pos_score.shape == (E_pos, 1)
    assert neg_score.shape == (E_neg, 1)
    assert bool(jnp.isfinite(loss))
    print("KERNEL_OK")
</pallas_src>

<mosaic_0001>
module attributes {stable_mosaic.version = 11 : i64} {
  func.func @_skipgram_kernel(%arg0: i32, %arg1: memref<32x128xf32, #tpu.memory_space<vmem>>, %arg2: memref<32x128xf32, #tpu.memory_space<vmem>>, %arg3: memref<32x4x128xf32, #tpu.memory_space<vmem>>, %arg4: memref<1x1xf32, #tpu.memory_space<vmem>>) attributes {dimension_semantics = [#tpu.dimension_semantics<arbitrary>], iteration_bounds = array<i64: 4>, scalar_prefetch = 0 : i64, scratch_operands = 0 : i64, tpu.core_type = #tpu.core_type<tc>, window_params = [{transform_indices = @transform_0, window_bounds = array<i64: 32, 128>}, {transform_indices = @transform_1, window_bounds = array<i64: 32, 128>}, {transform_indices = @transform_2, window_bounds = array<i64: 32, 4, 128>}, {pipeline_mode = #tpu.pipeline_mode<synchronous>, transform_indices = @transform_3, window_bounds = array<i64: 1, 1>}]} {
    %c0_i32 = arith.constant 0 : i32
    %0 = arith.cmpi eq, %arg0, %c0_i32 : i32
    %1 = arith.extui %0 : i1 to i32
    %c0_i32_0 = arith.constant 0 : i32
    %2 = arith.cmpi ne, %1, %c0_i32_0 : i32
    scf.if %2 {
      %cst_25 = arith.constant 0.000000e+00 : f32
      %51 = vector.broadcast %cst_25 : f32 to vector<1x1xf32>
      %c0_26 = arith.constant 0 : index
      %c0_27 = arith.constant 0 : index
      %52 = vector.load %arg4[%c0_26, %c0_27] : memref<1x1xf32, #tpu.memory_space<vmem>>, vector<1x1xf32>
      tpu.vector_store %arg4[%c0_26, %c0_27], %51 {strides = array<i32>} : memref<1x1xf32, #tpu.memory_space<vmem>>, vector<1x1xf32>,
    } else {
    }
    %c0 = arith.constant 0 : index
    %c0_1 = arith.constant 0 : index
    %3 = vector.load %arg1[%c0, %c0_1] : memref<32x128xf32, #tpu.memory_space<vmem>>, vector<32x128xf32>
    %c0_2 = arith.constant 0 : index
    %c0_3 = arith.constant 0 : index
    %4 = vector.load %arg2[%c0_2, %c0_3] : memref<32x128xf32, #tpu.memory_space<vmem>>, vector<32x128xf32>
    %c0_4 = arith.constant 0 : index
    %c0_5 = arith.constant 0 : index
    %c0_6 = arith.constant 0 : index
    %5 = vector.load %arg3[%c0_4, %c0_5, %c0_6] : memref<32x4x128xf32, #tpu.memory_space<vmem>>, vector<32x4x128xf32>
    %6 = arith.mulf %3, %4 : vector<32x128xf32>
    %cst = arith.constant dense<0.000000e+00> : vector<32xf32>
    %7 = vector.multi_reduction <add>, %6, %cst [1] : vector<32x128xf32> to vector<32xf32>
    %8 = vector.shape_cast %7 : vector<32xf32> to vector<32x1xf32>
    %cst_7 = arith.constant -1.000000e+01 : f32
    %cst_8 = arith.constant 1.000000e+01 : f32
    %9 = vector.broadcast %cst_7 : f32 to vector<32x1xf32>
    %10 = arith.maximumf %9, %8 : vector<32x1xf32>
    %11 = vector.broadcast %cst_8 : f32 to vector<32x1xf32>
    %12 = arith.minimumf %11, %10 : vector<32x1xf32>
    %cst_9 = arith.constant 0.000000e+00 : f32
    %13 = vector.broadcast %cst_9 : f32 to vector<32x1xf32>
    %14 = arith.subf %13, %12 : vector<32x1xf32>
    %cst_10 = arith.constant 0.000000e+00 : f32
    %15 = vector.broadcast %cst_10 : f32 to vector<32x1xf32>
    %16 = arith.maximumf %14, %15 : vector<32x1xf32>
    %17 = math.absf %14 : vector<32x1xf32>
    %cst_11 = arith.constant 0.000000e+00 : f32
    %18 = vector.broadcast %cst_11 : f32 to vector<32x1xf32>
    %19 = arith.subf %18, %17 : vector<32x1xf32>
    %20 = math.exp %19 : vector<32x1xf32>
    %cst_12 = arith.constant 1.000000e+00 : f32
    %21 = vector.broadcast %cst_12 : f32 to vector<32x1xf32>
    %22 = arith.addf %21, %20 : vector<32x1xf32>
    %23 = math.log %22 : vector<32x1xf32>
    %24 = arith.addf %16, %23 : vector<32x1xf32>
    %25 = vector.shape_cast %3 : vector<32x128xf32> to vector<32x1x128xf32>
    %26 = vector.broadcast %25 : vector<32x1x128xf32> to vector<32x4x128xf32>
    %27 = arith.mulf %5, %26 : vector<32x4x128xf32>
    %cst_13 = arith.constant dense<0.000000e+00> : vector<32x4xf32>
    %28 = vector.multi_reduction <add>, %27, %cst_13 [2] : vector<32x4x128xf32> to vector<32x4xf32>
    %cst_14 = arith.constant -1.000000e+01 : f32
    %cst_15 = arith.constant 1.000000e+01 : f32
    %29 = vector.broadcast %cst_14 : f32 to vector<32x4xf32>
    %30 = arith.maximumf %29, %28 : vector<32x4xf32>
    %31 = vector.broadcast %cst_15 : f32 to vector<32x4xf32>
    %32 = arith.minimumf %31, %30 : vector<32x4xf32>
    %cst_16 = arith.constant 0.000000e+00 : f32
    %33 = vector.broadcast %cst_16 : f32 to vector<32x4xf32>
    %34 = arith.maximumf %32, %33 : vector<32x4xf32>
    %35 = math.absf %32 : vector<32x4xf32>
    %cst_17 = arith.constant 0.000000e+00 : f32
    %36 = vector.broadcast %cst_17 : f32 to vector<32x4xf32>
    %37 = arith.subf %36, %35 : vector<32x4xf32>
    %38 = math.exp %37 : vector<32x4xf32>
    %cst_18 = arith.constant 1.000000e+00 : f32
    %39 = vector.broadcast %cst_18 : f32 to vector<32x4xf32>
    %40 = arith.addf %39, %38 : vector<32x4xf32>
    %41 = math.log %40 : vector<32x4xf32>
    %42 = arith.addf %34, %41 : vector<32x4xf32>
    %cst_19 = arith.constant dense<0.000000e+00> : vector<32xf32>
    %43 = vector.multi_reduction <add>, %42, %cst_19 [1] : vector<32x4xf32> to vector<32xf32>
    %44 = vector.shape_cast %43 : vector<32xf32> to vector<32x1xf32>
    %c0_20 = arith.constant 0 : index
    %c0_21 = arith.constant 0 : index
    %45 = vector.load %arg4[%c0_20, %c0_21] : memref<1x1xf32, #tpu.memory_space<vmem>>, vector<1x1xf32>
    %46 = arith.addf %24, %44 : vector<32x1xf32>
    %cst_22 = arith.constant dense<0.000000e+00> : vector<1xf32>
    %47 = vector.multi_reduction <add>, %46, %cst_22 [0] : vector<32x1xf32> to vector<1xf32>
    %48 = vector.shape_cast %47 : vector<1xf32> to vector<1x1xf32>
    %49 = arith.addf %45, %48 : vector<1x1xf32>
    %c0_23 = arith.constant 0 : index
    %c0_24 = arith.constant 0 : index
    %50 = vector.load %arg4[%c0_23, %c0_24] : memref<1x1xf32, #tpu.memory_space<vmem>>, vector<1x1xf32>
    tpu.vector_store %arg4[%c0_23, %c0_24], %49 {strides = array<i32>} : memref<1x1xf32, #tpu.memory_space<vmem>>, vector<1x1xf32>,
    return
  }
  func.func @transform_0(%arg0: i32) -> (i32, i32) {
    %c0_i32 = arith.constant 0 : i32
    %c0_i32_0 = arith.constant 0 : i32
    return %arg0, %c0_i32 : i32, i32
  }
  func.func @transform_1(%arg0: i32) -> (i32, i32) {
    %c0_i32 = arith.constant 0 : i32
    %c0_i32_0 = arith.constant 0 : i32
    return %arg0, %c0_i32 : i32, i32
  }
  func.func @transform_2(%arg0: i32) -> (i32, i32, i32) {
    %c0_i32 = arith.constant 0 : i32
    %c0_i32_0 = arith.constant 0 : i32
    %c0_i32_1 = arith.constant 0 : i32
    return %arg0, %c0_i32, %c0_i32_0 : i32, i32, i32
  }
  func.func @transform_3(%arg0: i32) -> (i32, i32) {
    %c0_i32 = arith.constant 0 : i32
    %c0_i32_0 = arith.constant 0 : i32
    %c0_i32_1 = arith.constant 0 : i32
    return %c0_i32, %c0_i32_0 : i32, i32
  }
}

</mosaic_0001>

<bundles_post_ra>
// kernel: tpu_custom_call.1
= control target key start
LH: loop header
LB: loop body
LE: loop exit
PB: predicated region body
PF: predicated region fallthrough
CT: control target
= control target key end

     0   :  { %8 = vsyncpa [#allocation3], 0  ;;  %s2790_s0 = inlined_call_operand.hbm [shape: f32[128,128], index: 0, kind: input, shape index: {}]   ;;  %s2791_s1 = inlined_call_operand.hbm [shape: f32[128,128], index: 1, kind: input, shape index: {}]   ;;  %s2792_s2 = inlined_call_operand.hbm [shape: f32[128,4,128], index: 2, kind: input, shape index: {}]   ;;  %s2793_s3 = inlined_call_operand.hbm [shape: f32[1,1], index: 3, kind: output, shape index: {}]  }
   0x1   :  { %10 = vsyncpa [#allocation3 + $0x1], 0 }
   0x2   :  { %11 = vsyncpa [#allocation6], 0 }
   0x3   :  { %13 = vsyncpa [#allocation6 + $0x1], 0 }
   0x4   :  { %14 = vsyncpa [#allocation4], 0  ;;  %s1995_s12 = smov 0   ;;  %s1997_s13 = smov 0  }
   0x5   :  { %s1999_s14 = smov 0   ;;  %s2001_s15 = smov 0  }
   0x6 LB: > { %s2014_s16 = sadd.s32 4294967295, %s1963_s15   ;;  %s2017_s17 = sadd.s32 1, %s1963_s15   ;;  %s1963_s15 = sphi %s2001_s15, %s2824_s15   ;;  %s1959_s14 = sphi %s1999_s14, %s2823_s14   ;;  %s1955_s13 = sphi %s1997_s13, %s2822_s13   ;;  %s1951_s12 = sphi %s1995_s12, %s2821_s12  }
   0x7   : > { %s24_s18 = ssub.s32 %s1963_s15, %s2017_s17  ;;  %s27_s19 = sadd.s32 1, %s1959_s14 }
   0x8   : > { %p25_p0 = scmp.eq.s32.totalorder %s24_s18, 0  ;;  %p34_p1 = scmp.ne.s32.totalorder %s1959_s14, %s1955_s13 }
   0x9   : > { %p35_p2 = scmp.eq.s32.totalorder %s1963_s15, 0  ;;  %p40_p3 = scmp.ne.s32.totalorder %s1955_s13, %s1951_s12 }
   0xa   : > { %s2027_s20 = scalar_select %p25_p0, %s1959_s14, %s27_s19  }
   0xb   : > { %p36_p4 = por %p35_p2, %p34_p1  ;;  %p41_p5 = scmp.eq.s32.totalorder %s2014_s16, 0 }
   0xc   : > { %p1615_p6 = scmp.lt.s32.totalorder %s1963_s15, 4  ;;  %s2036_s22 = sand.u32 1, %s1959_s14  }
   0xd   : > { %p2031_p7 = por %p41_p5, %p40_p3  ;;  %s1538_s23 = sshll.u32 %s2036_s22, 5 }
   0xe   : > { %s1592_s24 = sshll.u32 %s1963_s15, 9  ;;  %p2040_p8 = pnand %p1615_p6, %p36_p4 }
   0xf   : > { %s2804_s21 = scalar_select %p2031_p7, 1, 0 }
  0x10   : > { %s158_s26 = sand.u32 1, %s1963_s15   ;;  %s2050_s29 = scalar_lea.hbm %s2791_s1, %s1592_s24 }
  0x11   : > { %s162_s30 = scalar_lea.vmem [#allocation5], %s1538_s23  ;;  %s2058_s5 = scalar_lea.sflag [#allocation6], %s158_s26 }
  0x12   : > { %s169_s4 = sshll.u32 %s162_s30, 4  ;;  %s1805_s6 = scalar_lea.hbm %s2050_s29, 512  ;;  %s2055_s4 = int_to_ptr.vmem [resolvable:$true] %s169_s4 }
  0x13   : > { %p1806_p11 = scmp.ne.s32.totalorder %s2050_s29, %s1805_s6  ;;  %p2064_p12 = pneg %p2040_p8 }
  0x14   : > { %s1810_s10 = scalar_lea.hbm %s2791_s1, 2048  ;;  %p1811_p1 = scmp.lt.u32.totalorder %s2050_s29, %s2791_s1 }
  0x15   : > { %p1808_p13 = pnand %p2064_p12, %p1806_p11  ;;  %p1812_p2 = scmp.lt.u32.totalorder %s1810_s10, %s1805_s6 }
  0x16   : > { %p1814_p4 = scmp.lt.u32.totalorder %s1805_s6, %s2050_s29 }
  0x17   : > { %p1809_p0 = pneg %p1808_p13  ;;  %p1813_p3 = por %p1812_p2, %p1811_p1 }
  0x19   : > { %p1815_p5 = por %p1814_p4, %p1813_p3 }
  0x1b   : > { %p1816_p6 = pnand %p1815_p5, %p1809_p0 }
  0x1d   : > { %1819 = shalt.err (!%p1816_p6)
}
  0x1e   : > { %s1820_s18 = scalar_lea.vmem %s2055_s4, 512  ;;  %s1965_s19 = smov [#allocation5]  }
  0x1f   : > { %p1821_p11 = scmp.ne.s32.totalorder %s2055_s4, %s1820_s18  ;;  %s1825_s26 = sshll.u32 %s1965_s19, 4  ;;  %s1826_s26 = int_to_ptr.vmem [resolvable:$false] %s1825_s26 }
  0x20   : > { %s1827_s27 = scalar_lea.vmem %s1826_s26, 1024  ;;  %p1828_p10 = scmp.lt.s32.totalorder %s2055_s4, %s1826_s26 }
  0x21   : > { %p1823_p13 = pnand %p1821_p11, %p2064_p12  ;;  %p1829_p7 = scmp.lt.s32.totalorder %s1827_s27, %s1820_s18 }
  0x23   : > { %p1824_p9 = pneg %p1823_p13  ;;  %p1830_p1 = por %p1829_p7, %p1828_p10 }
  0x25   : > { %p1831_p2 = pnand %p1830_p1, %p1824_p9 }
  0x27   : > { %1834 = shalt.err (!%p1831_p2)
}
  0x28   : > { %s1966_s28 = smov 128   ;;  %s1967_s30 = smov 8  }
  0x29   : > { %1611 = dma.hbm_to_vmem [thread:$0]  (!%p2040_p8), %s2050_s29, 512, %s2055_s4, %s2058_s5, %s1966_s28, %s1966_s28, %s1967_s30  }
  0x2a   : > { %p2807_p7 = scmp.lt.s32.totalorder %s1963_s15, 5  ;;  %p2808_p9 = scmp.ge.s32.totalorder %s1963_s15, 1 }
  0x2b   : > { %s2104_s10 = scalar_lea.hbm %s2790_s0, %s1592_s24  ;;  %s141_s11 = scalar_lea.vmem [#allocation2], %s1538_s23 }
  0x2c   : > { %p2095_p10 = pnand %p2808_p9, %p2807_p7  ;;  %s148_s12 = sshll.u32 %s141_s11, 4  ;;  %s2109_s12 = int_to_ptr.vmem [resolvable:$true] %s148_s12 }
  0x2d   : > { %s1544_s29 = sshll.u32 %s2036_s22, 7  ;;  %s138_s4 = scalar_lea.sflag [#allocation3], %s2036_s22 }
  0x2e   : > { %s2809_s6 = scalar_select %p2095_p10, 1, 0 }
  0x2f   : > { %s1835_s18 = scalar_lea.hbm %s2104_s10, 512  ;;  %s1840_s24 = scalar_lea.hbm %s2790_s0, 2048 }
  0x30   : > { %p1836_p0 = scmp.ne.s32.totalorder %s2104_s10, %s1835_s18  ;;  %p1841_p5 = scmp.lt.u32.totalorder %s2104_s10, %s2790_s0 }
  0x31   : > { %p1842_p6 = scmp.lt.u32.totalorder %s1840_s24, %s1835_s18  ;;  %p1844_p13 = scmp.lt.u32.totalorder %s1835_s18, %s2104_s10 }
  0x32   : > { %p1838_p3 = pnand %p1836_p0, %p2064_p12 }
  0x33   : > { %p1843_p11 = por %p1842_p6, %p1841_p5 }
  0x34   : > { %p1839_p4 = pneg %p1838_p3 }
  0x35   : > { %p1845_p1 = por %p1844_p13, %p1843_p11 }
  0x37   : > { %p1846_p2 = pnand %p1845_p1, %p1839_p4 }
  0x39   : > { %1849 = shalt.err (!%p1846_p2)
}
  0x3a   : > { %s1850_s23 = scalar_lea.vmem %s2109_s12, 512  ;;  %s1968_s9 = smov [#allocation2]  }
  0x3b   : > { %p1851_p7 = scmp.ne.s32.totalorder %s2109_s12, %s1850_s23  ;;  %s1855_s11 = sshll.u32 %s1968_s9, 4  ;;  %s1856_s11 = int_to_ptr.vmem [resolvable:$false] %s1855_s11 }
  0x3c   : > { %s1857_s19 = scalar_lea.vmem %s1856_s11, 1024  ;;  %p1858_p3 = scmp.lt.s32.totalorder %s2109_s12, %s1856_s11 }
  0x3d   : > { %p1853_p9 = pnand %p1851_p7, %p2064_p12  ;;  %p1859_p10 = scmp.lt.s32.totalorder %s1857_s19, %s1850_s23 }
  0x3f   : > { %p1854_p0 = pneg %p1853_p9  ;;  %p1860_p5 = por %p1859_p10, %p1858_p3 }
  0x41   : > { %p1861_p6 = pnand %p1860_p5, %p1854_p0 }
  0x43   : > { %1864 = shalt.err (!%p1861_p6)
}
  0x44   : > { %1608 = dma.hbm_to_vmem [thread:$0]  (!%p2040_p8), %s2104_s10, 512, %s2109_s12, %s138_s4, %s1966_s28, %s1966_s28, %s1967_s30  }
  0x45   : > { %s1594_s18 = sshll.u32 %s1963_s15, 11  ;;  %s183_s26 = scalar_lea.vmem [#allocation7], %s1544_s29 }
  0x46   : > { %s190_s24 = sshll.u32 %s183_s26, 4  ;;  %s2144_s23 = scalar_lea.hbm %s2792_s2, %s1594_s18  ;;  %s2146_s24 = int_to_ptr.vmem [resolvable:$true] %s190_s24 }
  0x47   : > { %s1865_s9 = scalar_lea.hbm %s2144_s23, 2048  ;;  %s1870_s28 = scalar_lea.hbm %s2792_s2, 8192 }
  0x48   : > { %p1866_p10 = scmp.ne.s32.totalorder %s2144_s23, %s1865_s9  ;;  %p1871_p13 = scmp.lt.u32.totalorder %s2144_s23, %s2792_s2 }
  0x49   : > { %p1872_p1 = scmp.lt.u32.totalorder %s1870_s28, %s1865_s9  ;;  %p1874_p7 = scmp.lt.u32.totalorder %s1865_s9, %s2144_s23 }
  0x4a   : > { %p1868_p4 = pnand %p1866_p10, %p2064_p12 }
  0x4b   : > { %p1873_p2 = por %p1872_p1, %p1871_p13 }
  0x4c   : > { %p1869_p11 = pneg %p1868_p4 }
  0x4d   : > { %p1875_p9 = por %p1874_p7, %p1873_p2 }
  0x4f   : > { %p1876_p0 = pnand %p1875_p9, %p1869_p11 }
  0x51   : > { %1879 = shalt.err (!%p1876_p0)
}
  0x52   : > { %s1880_s12 = scalar_lea.vmem %s2146_s24, 2048  ;;  %s1969_s29 = smov [#allocation7]  }
  0x53   : > { %p1881_p3 = scmp.ne.s32.totalorder %s2146_s24, %s1880_s12  ;;  %s1885_s4 = sshll.u32 %s1969_s29, 4  ;;  %s1886_s4 = int_to_ptr.vmem [resolvable:$false] %s1885_s4 }
  0x54   : > { %s1887_s11 = scalar_lea.vmem %s1886_s4, 4096  ;;  %p1888_p10 = scmp.lt.s32.totalorder %s2146_s24, %s1886_s4 }
  0x55   : > { %p1883_p5 = pnand %p1881_p3, %p2064_p12  ;;  %p1889_p4 = scmp.lt.s32.totalorder %s1887_s11, %s1880_s12 }
  0x57   : > { %p1884_p6 = pneg %p1883_p5  ;;  %p1890_p13 = por %p1889_p4, %p1888_p10 }
  0x59   : > { %p1891_p1 = pnand %p1890_p13, %p1884_p6 }
  0x5b   : > { %1894 = shalt.err (!%p1891_p1)
}
  0x5c   : > { %s1970_s19 = smov 64   ;;  %s1971_s18 = smov 4  }
  0x5d   : > { %1614 = dma.hbm_to_vmem [thread:$0]  (!%p2040_p8), %s2144_s23, 2048, %s2146_s24, %s2058_s5, %s1970_s19, %s1970_s19, %s1971_s18  }
  0x5e   : > { %p2810_p12 = scmp.ne.s32.totalorder %s2809_s6, 0 }
  0x5f   : > { %s204_s7 = sand.u32 (!%p2810_p12), 1, %s1955_s13   ;;  %p2811_p11 = scmp.ne.s32.totalorder (!%p2810_p12), %s2804_s21, 0 }
  0x60   : > { %202 = sbr.rel (%p2810_p12) target bundleno = 561 (0x231), region = 32  ;;  %s1548_s26 = sshll.u32 (!%p2810_p12), %s204_s7, 5 }
  0x61   : > { %s205_s27 = scalar_lea.sflag (!%p2810_p12), [#allocation3], %s204_s7  ;;  %s2173_s8 = scalar_lea.vmem (!%p2810_p12), [#allocation2], %s1548_s26 }
  0x67   : > { %1938 = dma.done.wait (%p2811_p11), %s205_s27, 512  }
  0x68   : > { %1940 = vsyncadd (%p2811_p11), %s205_s27, 4294966784  ;;  %s213_s9 = sand.u32 1, %s2014_s16   ;;  %s2180_s5 = scalar_lea.vmem [#allocation5], %s1548_s26 }
  0x69   : > { %s214_s25 = scalar_lea.sflag [#allocation6], %s213_s9 }
  0x6a   : > { %1942 = dma.done.wait (%p2811_p11), %s214_s25, 2560  }
  0x6b   : > { %1944 = vsyncadd (%p2811_p11), %s214_s25, 4294964736  ;;  %s1550_s6 = sshll.u32 %s204_s7, 7  ;;  %p1551_p8 = scmp.ne.s32.totalorder %s2014_s16, 0 }
  0x6c   : > { %s2186_s24 = scalar_lea.vmem [#allocation7], %s1550_s6  ;;  %vm261_vm0 = vcmask (!%p1551_p8), 0   ;;  %v1972_v0 = vmov (!%p1551_p8), 0.0  }
  0x6d   : > { %260 = sbr.rel (%p1551_p8) target bundleno = 116 (0x74), region = 48  ;;  %262 = vst.msk [vmem:[#allocation8] sm:$0x1] (!%p1551_p8), %vm261_vm0, %v1972_v0 }
  0x74 PF: > { %v371_v1 = vlaneseq  ;;  %v1973_v2 = vmov 1966171168   ;;  %v2190_v4 = vld [vmem:[%s2173_s8 + $0x8] sm:$0xff]  ;;  %v2193_v8 = vld [vmem:[%s2173_s8] sm:$0xff]  ;;  %v2200_v11 = vld [vmem:[%s2173_s8 + $0x10] sm:$0xff]  ;;  %vm755_vm1 = vcmask 1043456  }
  0x75   : > { %v369_v3 = vunpack.c.l.s4 %v1973_v2  ;;  %v416_v9 = vcombine.high %v2190_v4, %v2190_v4  ;;  %v367_v12 = vcombine.high %v2193_v8, %v2193_v8  ;;  %v279_v20 = vld [vmem:[%s2186_s24 + $0x20] sm:$0xf]  ;;  %v283_v26 = vld [vmem:[%s2186_s24 + $0x30] sm:$0xf]  ;;  %v280_v45 = vld [vmem:[%s2186_s24 + $0x24] sm:$0xf] }
  0x76   : > { %v372_v5 = vshrl.u32 %v371_v1, 7  ;;  %v1237_v6 = vand.u32 127, %v371_v1  ;;  %v271_v25 = vld [vmem:[%s2186_s24] sm:$0xf]  ;;  %v275_v44 = vld [vmem:[%s2186_s24 + $0x10] sm:$0xf] }
  0x77   : > { %v370_v7 = vunpack.c.0.s8 %v369_v3  ;;  %v287_v27 = vld [vmem:[%s2186_s24 + $0x40] sm:$0xf]  ;;  %v281_v55 = vld [vmem:[%s2186_s24 + $0x28] sm:$0xf]  ;;  %v272_v56 = vld [vmem:[%s2186_s24 + $0x4] sm:$0xf] }
  0x78   : > { %v2197_v10 = vsub.s32 %v1237_v6, %v372_v5  ;;  %v2206_v14 = vsub.s32 0, %v372_v5  ;;  %v288_v6 = vld [vmem:[%s2186_s24 + $0x44] sm:$0xf]  ;;  %vm1366_vm2 = vcmask 1041409   ;;  %vm1368_vm3 = vcmask 1042434   ;;  %s1974_s21 = smov [#allocation8]  }
  0x79   : > { %v2204_v13 = vsub.s32 %v370_v7, %v372_v5  ;;  %v2266_v5 = vld [vmem:[%s2173_s8 + $0x18] sm:$0xff]  ;;  %v273_v7 = vld [vmem:[%s2186_s24 + $0x8] sm:$0xf]  ;;  %vm1370_vm4 = vcmask 1043459   ;;  %vm1372_vm5 = vcmask 1044484   ;;  %vm1376_vm6 = vcmask 1046534  }
  0x7a   : > { %vm1374_vm7 = vcmask 1045509   ;;  %vm1378_vm8 = vcmask 1047559   ;;  %vm1405_vm9 = vcmask 31744   ;;  %s1442_s23 = sshll.u32 %s1974_s21, 4  ;;  %vm1433_vm10 = vcmask 0   ;;  %p1616_p2 = scmp.eq.s32.totalorder %s2014_s16, 3  ;;  %s1443_s23 = int_to_ptr.vmem [resolvable:$true] %s1442_s23 }
  0x7b   : > { %v423_v15 = vrot.slane %v2190_v4, %v2204_v13  ;;  %v374_v16 = vrot.slane %v2193_v8, %v2204_v13  ;;  %v2213_v17 = vrot.slane %v416_v9, %v2204_v13  ;;  %v472_v18 = vrot.slane %v2200_v11, %v2204_v13  ;;  %s1895_s15 = scalar_lea.vmem %s1443_s23, 16  ;;  %s1901_s22 = scalar_lea.vmem %s1443_s23, 32 }
  0x7c   : > { %v2218_v19 = vrot.slane %v367_v12, %v2204_v13  ;;  %p1896_p7 = scmp.ne.s32.totalorder %s1443_s23, %s1895_s15  ;;  %p1902_p3 = scmp.lt.s32.totalorder %s1443_s23, %s1443_s23 }
  0x7d   : > { %v439_v21 = vrot.slane %v423_v15, %v2204_v13  ;;  %v390_v22 = vrot.slane %v374_v16, %v2204_v13  ;;  %v2225_v23 = vrot.slane %v2213_v17, %v2204_v13  ;;  %v2228_v24 = vrot.slane %v472_v18, %v2204_v13  ;;  %p1903_p5 = scmp.lt.s32.totalorder %s1901_s22, %s1895_s15 }
  0x7e   : > { %v431_v28 = vcombine.high %v423_v15, %v423_v15  ;;  %v2235_v29 = vrot.slane %v2218_v19, %v2204_v13  ;;  %v382_v30 = vcombine.high %v374_v16, %v374_v16  ;;  %v480_v31 = vcombine.high %v472_v18, %v472_v18  ;;  %v282_v16 = vld [vmem:[%s2186_s24 + $0x2c] sm:$0xf]  ;;  %p1897_p9 = pnand %p1896_p7, %p1616_p2 }
  0x7f   : > { %v598_v32 = vrot.slane %v439_v21, %v2206_v14  ;;  %v566_v33 = vrot.slane %v390_v22, %v2206_v14  ;;  %v614_v34 = vrot.slane %v2225_v23, %v2206_v14  ;;  %v630_v35 = vrot.slane %v2228_v24, %v2206_v14  ;;  %p1904_p6 = por %p1903_p5, %p1902_p3 }
  0x80   : > { %v453_v36 = vrot.slane %v431_v28, %v2204_v13  ;;  %v582_v37 = vrot.slane %v2235_v29, %v2206_v14  ;;  %v461_v38 = vcombine.high %v439_v21, %v439_v21  ;;  %v404_v39 = vrot.slane %v382_v30, %v2204_v13  ;;  %p1898_p0 = pneg %p1897_p9 }
  0x81   : > { %v731_v40 = vmul.f32 %v598_v32, %v279_v20  ;;  %v723_v41 = vmul.f32 %v566_v33, %v271_v25  ;;  %v735_v42 = vmul.f32 %v614_v34, %v283_v26  ;;  %v739_v43 = vmul.f32 %v630_v35, %v287_v27  ;;  %v289_v34 = vld [vmem:[%s2186_s24 + $0x48] sm:$0xf] }
  0x82   : > { %v602_v46 = vrot.slane %v453_v36, %v2206_v14  ;;  %v727_v50 = vmul.f32 %v582_v37, %v275_v44  ;;  %v606_v51 = vrot.slane %v461_v38, %v2206_v14  ;;  %v570_v52 = vrot.slane %v404_v39, %v2206_v14  ;;  %v276_v37 = vld [vmem:[%s2186_s24 + $0x14] sm:$0xf]  ;;  %p1905_p10 = pnand %p1904_p6, %p1898_p0 }
  0x83   : > { %v780_v47 = vsel %vm755_vm1, %v731_v40, 0.0  ;;  %v756_v48 = vsel %vm755_vm1, %v723_v41, 0.0  ;;  %v792_v49 = vsel %vm755_vm1, %v735_v42, 0.0  ;;  %v804_v53 = vsel %vm755_vm1, %v739_v43, 0.0  ;;  %v284_v44 = vld [vmem:[%s2186_s24 + $0x34] sm:$0xf] }
  0x84   : > { %781 = vadd.xlane.f32.xlu1 %v780_v47  ;;  %757 = vadd.xlane.f32.xlu0 %v756_v48  ;;  %v732_v54 = vmul.f32 %v602_v46, %v280_v45  ;;  %v502_v57 = vrot.slane %v480_v31, %v2204_v13  ;;  %v412_v58 = vcombine.high %v390_v22, %v390_v22  ;;  %v768_v60 = vsel %vm755_vm1, %v727_v50, 0.0  ;;  %v290_v48 = vld [vmem:[%s2186_s24 + $0x4c] sm:$0xf] }
  0x85   : > { %v463_v59 = vcombine.high %v453_v36, %v453_v36  ;;  %v733_v61 = vmul.f32 %v606_v51, %v281_v55  ;;  %v724_v62 = vmul.f32 %v570_v52, %v272_v56  ;;  %v414_v63 = vcombine.high %v404_v39, %v404_v39 }
  0x86   : > { %v783_v0 = vsel %vm755_vm1, %v732_v54, 0.0  ;;  %v634_v1 = vrot.slane %v502_v57, %v2206_v14  ;;  %v574_v2 = vrot.slane %v412_v58, %v2206_v14  ;;  %v383_v3 = vcombine.high %v2218_v19, %v2218_v19  ;;  %v296_v58 = vld [vmem:[%s2186_s24 + $0x64] sm:$0xf] }
  0x87   : > { %v610_v9 = vrot.slane %v463_v59, %v2206_v14  ;;  %v510_v12 = vcombine.high %v2228_v24, %v2228_v24  ;;  %v786_v15 = vsel %vm755_vm1, %v733_v61, 0.0  ;;  %v578_v18 = vrot.slane %v414_v63, %v2206_v14  ;;  %v274_v24 = vld [vmem:[%s2186_s24 + $0xc] sm:$0xf] }
  0x88   : > { %793 = vadd.xlane.f32.xlu1 %v792_v49  ;;  %805 = vadd.xlane.f32.xlu0 %v804_v53  ;;  %v432_v19 = vcombine.high %v2213_v17, %v2213_v17  ;;  %v521_v20 = vrot.slane %v2266_v5, %v2204_v13  ;;  %v759_v21 = vsel %vm755_vm1, %v724_v62, 0.0  ;;  %v740_v22 = vmul.f32 %v634_v1, %v288_v6  ;;  %v277_v62 = vld [vmem:[%s2186_s24 + $0x18] sm:$0xf] }
  0x89   : > { %v725_v25 = vmul.f32 %v574_v2, %v273_v7  ;;  %v2283_v26 = vrot.slane %v383_v3, %v2204_v13  ;;  %v734_v27 = vmul.f32 %v610_v9, %v282_v16  ;;  %v638_v28 = vrot.slane %v510_v12, %v2206_v14  ;;  %v285_v2 = vld [vmem:[%s2186_s24 + $0x38] sm:$0xf] }
  0x8a   : > { %v726_v30 = vmul.f32 %v578_v18, %v274_v24  ;;  %v2287_v17 = vrot.slane %v432_v19, %v2204_v13  ;;  %v512_v31 = vcombine.high %v502_v57, %v502_v57  ;;  %v807_v32 = vsel %vm755_vm1, %v740_v22, 0.0 }
  0x8b   : > { %v762_v33 = vsel %vm755_vm1, %v725_v25, 0.0  ;;  %v586_v35 = vrot.slane %v2283_v26, %v2206_v14  ;;  %v529_v36 = vcombine.high %v521_v20, %v521_v20  ;;  %v465_v38 = vcombine.high %v2200_v11, %v2200_v11  ;;  %v297_v25 = vld [vmem:[%s2186_s24 + $0x68] sm:$0xf] }
  0x8c   : > { %784 = vadd.xlane.f32.xlu1 %v783_v0  ;;  %769 = vadd.xlane.f32.xlu0 %v768_v60  ;;  %v789_v39 = vsel %vm755_vm1, %v734_v27, 0.0  ;;  %v765_v40 = vsel %vm755_vm1, %v726_v30, 0.0  ;;  %v741_v41 = vmul.f32 %v638_v28, %v289_v34  ;;  %v618_v42 = vrot.slane %v2287_v17, %v2206_v14 }
  0x8d   : > { %v728_v43 = vmul.f32 %v586_v35, %v276_v37  ;;  %v642_v45 = vrot.slane %v512_v31, %v2206_v14  ;;  %v537_v46 = vrot.slane %v521_v20, %v2204_v13  ;;  %v551_v47 = vrot.slane %v529_v36, %v2204_v13  ;;  %v291_v20 = vld [vmem:[%s2186_s24 + $0x50] sm:$0xf]  ;;  %v278_v35 = vld [vmem:[%s2186_s24 + $0x1c] sm:$0xf] }
  0x8e   : > { %v413_v49 = vcombine.high %v2235_v29, %v2235_v29  ;;  %v479_v50 = vrot.slane %v465_v38, %v2204_v13  ;;  %v810_v51 = vsel %vm755_vm1, %v741_v41, 0.0  ;;  %v736_v52 = vmul.f32 %v618_v42, %v284_v44  ;;  %v295_v29 = vld [vmem:[%s2186_s24 + $0x60] sm:$0xf] }
  0x8f   : > { %v462_v53 = vcombine.high %v2225_v23, %v2225_v23  ;;  %v771_v54 = vsel %vm755_vm1, %v728_v43, 0.0  ;;  %v742_v55 = vmul.f32 %v642_v45, %v290_v48  ;;  %v662_v56 = vrot.slane %v537_v46, %v2206_v14  ;;  %v298_v43 = vld [vmem:[%s2186_s24 + $0x6c] sm:$0xf] }
  0x90   : > { %787 = vadd.xlane.f32.xlu1 %v786_v15  ;;  %760 = vadd.xlane.f32.xlu0 %v759_v21  ;;  %v666_v57 = vrot.slane %v551_v47, %v2206_v14  ;;  %v590_v59 = vrot.slane %v413_v49, %v2206_v14  ;;  %v495_v60 = vrot.slane %v479_v50, %v2204_v13  ;;  %v795_v61 = vsel %vm755_vm1, %v736_v52, 0.0 }
  0x91   : > { %v622_v23 = vrot.slane %v462_v53, %v2206_v14  ;;  %v813_v63 = vsel %vm755_vm1, %v742_v55, 0.0  ;;  %v747_v0 = vmul.f32 %v662_v56, %v295_v29  ;;  %v559_v3 = vcombine.high %v537_v46, %v537_v46  ;;  %v292_v46 = vld [vmem:[%s2186_s24 + $0x54] sm:$0xf]  ;;  %v299_v53 = vld [vmem:[%s2186_s24 + $0x70] sm:$0xf] }
  0x92   : > { %v748_v1 = vmul.f32 %v666_v57, %v296_v58  ;;  %v729_v6 = vmul.f32 %v590_v59, %v277_v62  ;;  %v646_v7 = vrot.slane %v495_v60, %v2206_v14  ;;  %v514_v9 = vcombine.high %v2266_v5, %v2266_v5 }
  0x93   : > { %v737_v12 = vmul.f32 %v622_v23, %v285_v2  ;;  %v464_v15 = vcombine.high %v2287_v17, %v2287_v17  ;;  %v415_v16 = vcombine.high %v2283_v26, %v2283_v26  ;;  %v828_v18 = vsel %vm755_vm1, %v747_v0, 0.0  ;;  %v294_v0 = vld [vmem:[%s2186_s24 + $0x5c] sm:$0xf] }
  0x94   : > { %808 = vadd.xlane.f32.xlu1 %v807_v32  ;;  %763 = vadd.xlane.f32.xlu0 %v762_v33  ;;  %v831_v19 = vsel %vm755_vm1, %v748_v1, 0.0  ;;  %v670_v21 = vrot.slane %v559_v3, %v2206_v14  ;;  %v481_v22 = vcombine.high %v479_v50, %v479_v50  ;;  %v528_v24 = vrot.slane %v514_v9, %v2204_v13  ;;  %v286_v32 = vld [vmem:[%s2186_s24 + $0x3c] sm:$0xf] }
  0x95   : > { %v774_v27 = vsel %vm755_vm1, %v729_v6, 0.0  ;;  %v743_v28 = vmul.f32 %v646_v7, %v291_v20  ;;  %v626_v26 = vrot.slane %v464_v15, %v2206_v14  ;;  %v561_v30 = vcombine.high %v551_v47, %v551_v47  ;;  %v302_v9 = vld [vmem:[%s2186_s24 + $0x7c] sm:$0xf] }
  0x96   : > { %v798_v17 = vsel %vm755_vm1, %v737_v12, 0.0  ;;  %v749_v31 = vmul.f32 %v670_v21, %v297_v25  ;;  %v594_v33 = vrot.slane %v415_v16, %v2206_v14  ;;  %v509_v34 = vrot.slane %v481_v22, %v2204_v13  ;;  %v301_v12 = vld [vmem:[%s2186_s24 + $0x78] sm:$0xf]  ;;  %v267_v22 = vld [vmem:[%s2180_s5] sm:$0xff] }
  0x97   : > { %v544_v36 = vrot.slane %v528_v24, %v2204_v13  ;;  %v816_v37 = vsel %vm755_vm1, %v743_v28, 0.0  ;;  %v738_v38 = vmul.f32 %v626_v26, %v286_v32  ;;  %v530_v45 = vcombine.high %v528_v24, %v528_v24  ;;  %v270_v28 = vld [vmem:[%s2180_s5 + $0x18] sm:$0xff] }
  0x98   : > { %790 = vadd.xlane.f32.xlu1 %v789_v39  ;;  %766 = vadd.xlane.f32.xlu0 %v765_v40  ;;  %v674_v39 = vrot.slane %v561_v30, %v2206_v14  ;;  %v511_v40 = vcombine.high %v495_v60, %v495_v60  ;;  %v834_v41 = vsel %vm755_vm1, %v749_v31, 0.0  ;;  %v730_v42 = vmul.f32 %v594_v33, %v278_v35 }
  0x99   : > { %v650_v44 = vrot.slane %v509_v34, %v2206_v14  ;;  %v801_v47 = vsel %vm755_vm1, %v738_v38, 0.0  ;;  %v678_v49 = vrot.slane %v544_v36, %v2206_v14  ;;  %v558_v55 = vrot.slane %v530_v45, %v2204_v13 }
  0x9a   : > { %v750_v48 = vmul.f32 %v674_v39, %v298_v43  ;;  %v654_v50 = vrot.slane %v511_v40, %v2206_v14  ;;  %v513_v56 = vcombine.high %v509_v34, %v509_v34  ;;  %v560_v59 = vcombine.high %v544_v36, %v544_v36 }
  0x9b   : > { %v744_v52 = vmul.f32 %v650_v44, %v292_v46  ;;  %v751_v29 = vmul.f32 %v678_v49, %v299_v53  ;;  %v562_v23 = vcombine.high %v558_v55, %v558_v55  ;;  %v303_v25 = vmul.f32 %v267_v22, %v2193_v8 }
  0x9c   : > { %811 = vadd.xlane.f32.xlu0 %v810_v51  ;;  %772 = vadd.xlane.f32.xlu1 %v771_v54  ;;  %v777_v51 = vsel %vm755_vm1, %v730_v42, 0.0  ;;  %v293_v54 = vld [vmem:[%s2186_s24 + $0x58] sm:$0xf]  ;;  %v837_v57 = vsel %vm755_vm1, %v750_v48, 0.0  ;;  %v658_v62 = vrot.slane %v513_v56, %v2206_v14  ;;  %v686_v7 = vrot.slane %v560_v59, %v2206_v14 }
  0x9d   : > { %v745_v58 = vmul.f32 %v654_v50, %v293_v54  ;;  %v819_v60 = vsel %vm755_vm1, %v744_v52, 0.0  ;;  %v840_v13 = vsel %vm755_vm1, %v751_v29, 0.0  ;;  %v690_v6 = vrot.slane %v562_v23, %v2206_v14 }
  0x9e   : > { %v746_v3 = vmul.f32 %v658_v62, %v294_v0  ;;  %v306_v30 = vmul.f32 %v270_v28, %v2266_v5 }
  0x9f   : > { %v822_v1 = vsel %vm755_vm1, %v745_v58, 0.0 }
  0xa0   : > { %796 = vadd.xlane.f32.xlu0 %v795_v61  ;;  %814 = vadd.xlane.f32.xlu1 %v813_v63  ;;  %v682_v61 = vrot.slane %v558_v55, %v2206_v14  ;;  %v300_v63 = vld [vmem:[%s2186_s24 + $0x74] sm:$0xf]  ;;  %v825_v16 = vsel %vm755_vm1, %v746_v3, 0.0  ;;  %v268_v14 = vld [vmem:[%s2180_s5 + $0x8] sm:$0xff] }
  0xa1   : > { %v304_v24 = vmul.f32 %v268_v14, %v2190_v4 }
  0xa2   : > { %v752_v2 = vmul.f32 %v682_v61, %v300_v63 }
  0xa4   : > { %829 = vadd.xlane.f32.xlu0 %v828_v18  ;;  %832 = vadd.xlane.f32.xlu1 %v831_v19  ;;  %v843_v15 = vsel %vm755_vm1, %v752_v2, 0.0  ;;  %v754_v18 = vmul.f32 %v690_v6, %v302_v9  ;;  %v753_v19 = vmul.f32 %v686_v7, %v301_v12 }
  0xa6   : > { %v849_v20 = vsel %vm755_vm1, %v754_v18, 0.0  ;;  %v846_v21 = vsel %vm755_vm1, %v753_v19, 0.0 }
  0xa8   : > { %775 = vadd.xlane.f32.xlu0 %v774_v27  ;;  %799 = vadd.xlane.f32.xlu1 %v798_v17  ;;  %v269_v27 = vld [vmem:[%s2180_s5 + $0x10] sm:$0xff] }
  0xa9   : > { %v305_v26 = vmul.f32 %v269_v27, %v2200_v11 }
  0xac   : > { %817 = vadd.xlane.f32.xlu0 %v816_v37  ;;  %835 = vadd.xlane.f32.xlu1 %v834_v41 }
  0xb0   : > { %802 = vadd.xlane.f32.xlu1 %v801_v47  ;;  %778 = vadd.xlane.f32.xlu0 %v777_v51 }
  0xb4   : > { %838 = vadd.xlane.f32.xlu1 %v837_v57  ;;  %820 = vadd.xlane.f32.xlu0 %v819_v60 }
  0xb8   : > { %841 = vadd.xlane.f32.xlu1 %v840_v13  ;;  %823 = vadd.xlane.f32.xlu0 %v822_v1 }
  0xbc   : > { %844 = vadd.xlane.f32.xlu1 %v843_v15  ;;  %826 = vadd.xlane.f32.xlu0 %v825_v16 }
  0xc0   : > { %850 = vadd.xlane.f32.xlu1 %v849_v20  ;;  %847 = vadd.xlane.f32.xlu0 %v846_v21 }
  0xc4   : > { %307 = vadd.xlane.f32.xlu0 %v303_v25  ;;  %309 = vadd.xlane.f32.xlu1 %v304_v24 }
  0xc8   : > { %311 = vadd.xlane.f32.xlu0 %v305_v26  ;;  %313 = vadd.xlane.f32.xlu1 %v306_v30 }
 0x111   : > { %v2382_v17 = vpop.xlane.xlu1 %781  ;;  %v2384_v31 = vpop.xlane.xlu0 %757 }
 0x112   : > { %v1564_v32 = vclamps-f32 %v2382_v17, 10.0  ;;  %v1556_v8 = vclamps-f32 %v2384_v31, 10.0 }
 0x114   : > { %v956_v34 = vand.u32 2147483647, %v1564_v32  ;;  %v948_v11 = vand.u32 2147483647, %v1556_v8 }
 0x115   : > { %v2388_v33 = vpop.xlane.xlu1 %793  ;;  %v2390_v4 = vpop.xlane.xlu0 %805 }
 0x116   : > { %v1568_v5 = vclamps-f32 %v2388_v33, 10.0  ;;  %v988_v37 = vsub.f32 0.0, %v956_v34  ;;  %v980_v40 = vsub.f32 0.0, %v948_v11  ;;  %v1572_v42 = vclamps-f32 %v2390_v4, 10.0 }
 0x118   : > { %v960_v41 = vand.u32 2147483647, %v1568_v5  ;;  %v1028_v46 = vmul.f32 1.442695, %v988_v37  ;;  %v1012_v48 = vmul.f32 1.442695, %v980_v40 }
 0x119   : > { %v2397_v35 = vpop.xlane.xlu1 %784  ;;  %v2399_v36 = vpop.xlane.xlu0 %769  ;;  %v964_v50 = vand.u32 2147483647, %v1572_v42  ;;  %v2477_v17 = vmax.f32 %v1572_v42, 0.0 }
 0x11a   : > { %v1565_v38 = vclamps-f32 %v2397_v35, 10.0  ;;  %v1560_v39 = vclamps-f32 %v2399_v36, 10.0  ;;  %v992_v49 = vsub.f32 0.0, %v960_v41  ;;  %1661 = vpow2.f32 %v1028_v46 }
 0x11b   : > { %1663 = vpow2.f32 %v1012_v48  ;;  %v996_v57 = vsub.f32 0.0, %v964_v50 }
 0x11c   : > { %v957_v43 = vand.u32 2147483647, %v1565_v38  ;;  %v952_v47 = vand.u32 2147483647, %v1560_v39  ;;  %v1036_v56 = vmul.f32 1.442695, %v992_v49 }
 0x11d   : > { %v2408_v44 = vpop.xlane.xlu1 %787  ;;  %v2410_v45 = vpop.xlane.xlu0 %760  ;;  %v1044_v63 = vmul.f32 1.442695, %v996_v57  ;;  %v2487_v33 = vmax.f32 %v1560_v39, 0.0 }
 0x11e   : > { %v989_v51 = vsub.f32 0.0, %v957_v43  ;;  %v984_v54 = vsub.f32 0.0, %v952_v47  ;;  %v1566_v55 = vclamps-f32 %v2408_v44, 10.0  ;;  %v1557_v58 = vclamps-f32 %v2410_v45, 10.0 }
 0x11f   : > { %1665 = vpow2.f32 %v1036_v56 }
 0x120   : > { %v1030_v29 = vmul.f32 1.442695, %v989_v51  ;;  %v1020_v61 = vmul.f32 1.442695, %v984_v54  ;;  %v958_v62 = vand.u32 2147483647, %v1566_v55 }
 0x121   : > { %v2416_v52 = vpop.xlane.xlu1 %808  ;;  %v2418_v53 = vpop.xlane.xlu0 %763  ;;  %v949_v0 = vand.u32 2147483647, %v1557_v58 }
 0x122   : > { %v1573_v23 = vclamps-f32 %v2416_v52, 10.0  ;;  %1667 = vpow2.f32 %v1030_v29  ;;  %v990_v2 = vsub.f32 0.0, %v958_v62  ;;  %v1558_v6 = vclamps-f32 %v2418_v53, 10.0 }
 0x123   : > { %1669 = vpow2.f32 %v1020_v61  ;;  %v981_v12 = vsub.f32 0.0, %v949_v0 }
 0x124   : > { %v965_v3 = vand.u32 2147483647, %v1573_v23  ;;  %v1662_v7 = vpop.eup %1661  ;;  %1671 = vpow2.f32 %v1044_v63  ;;  %v1032_v18 = vmul.f32 1.442695, %v990_v2  ;;  %v950_v20 = vand.u32 2147483647, %v1558_v6 }
 0x125   : > { %v2422_v59 = vpop.xlane.xlu1 %790  ;;  %v2424_v60 = vpop.xlane.xlu0 %766  ;;  %v1084_v22 = vadd.f32 1.0, %v1662_v7  ;;  %v1014_v28 = vmul.f32 1.442695, %v981_v12  ;;  %v924_v63 = vmax.f32 %v1564_v32, 0.0  ;;  %v916_v7 = vmax.f32 %v1556_v8, 0.0 }
 0x126   : > { %v1664_v9 = vpop.eup %1663  ;;  %v997_v19 = vsub.f32 0.0, %v965_v3  ;;  %v1567_v21 = vclamps-f32 %v2422_v59, 10.0  ;;  %v1559_v14 = vclamps-f32 %v2424_v60, 10.0  ;;  %1673 = vpow2.f32 %v1032_v18 }
 0x127   : > { %v1076_v25 = vadd.f32 1.0, %v1664_v9  ;;  %v982_v37 = vsub.f32 0.0, %v950_v20  ;;  %1675 = vlog2.f32 %v1084_v22  ;;  %v2473_v18 = vmax.f32 %v1568_v5, 0.0 }
 0x128   : > { %v1046_v11 = vmul.f32 1.442695, %v997_v19  ;;  %v959_v40 = vand.u32 2147483647, %v1567_v21  ;;  %v951_v43 = vand.u32 2147483647, %v1559_v14 }
 0x129   : > { %v2431_v13 = vpop.xlane.xlu0 %811  ;;  %v2433_v1 = vpop.xlane.xlu1 %772  ;;  %1677 = vlog2.f32 %v1076_v25  ;;  %v1016_v56 = vmul.f32 1.442695, %v982_v37  ;;  %v2483_v22 = vmax.f32 %v1565_v38, 0.0  ;;  %v2498_v38 = vmax.f32 %v1557_v58, 0.0 }
 0x12a   : > { %v1574_v24 = vclamps-f32 %v2431_v13, 10.0  ;;  %v1666_v27 = vpop.eup %1665  ;;  %v1561_v26 = vclamps-f32 %v2433_v1, 10.0  ;;  %1679 = vpow2.f32 %v1014_v28  ;;  %v991_v57 = vsub.f32 0.0, %v959_v40 }
 0x12b   : > { %v1088_v47 = vadd.f32 1.0, %v1666_v27  ;;  %1681 = vpow2.f32 %v1046_v11  ;;  %v983_v62 = vsub.f32 0.0, %v951_v43  ;;  %v2493_v27 = vmax.f32 %v1566_v55, 0.0 }
 0x12c   : > { %v1668_v34 = vpop.eup %1667  ;;  %v966_v48 = vand.u32 2147483647, %v1574_v24  ;;  %v953_v51 = vand.u32 2147483647, %v1561_v26  ;;  %v1034_v32 = vmul.f32 1.442695, %v991_v57 }
 0x12d   : > { %v2438_v15 = vpop.xlane.xlu0 %796  ;;  %v2440_v16 = vpop.xlane.xlu1 %814  ;;  %v1085_v50 = vadd.f32 1.0, %v1668_v34  ;;  %1683 = vlog2.f32 %v1088_v47  ;;  %v1018_v19 = vmul.f32 1.442695, %v983_v62  ;;  %v2502_v36 = vmax.f32 %v1573_v23, 0.0 }
 0x12e   : > { %v1670_v46 = vpop.eup %1669  ;;  %v1569_v49 = vclamps-f32 %v2438_v15, 10.0  ;;  %v998_v0 = vsub.f32 0.0, %v966_v48  ;;  %v985_v12 = vsub.f32 0.0, %v953_v51  ;;  %v1575_v20 = vclamps-f32 %v2440_v16, 10.0 }
 0x12f   : > { %v1672_v54 = vpop.eup %1671  ;;  %v1080_v61 = vadd.f32 1.0, %v1670_v46  ;;  %1685 = vlog2.f32 %v1085_v50  ;;  %v2506_v39 = vmax.f32 %v1558_v6, 0.0  ;;  %v2519_v48 = vmax.f32 %v1567_v21, 0.0 }
 0x130   : > { %v961_v2 = vand.u32 2147483647, %v1569_v49  ;;  %v1092_v9 = vadd.f32 1.0, %v1672_v54  ;;  %1687 = vpow2.f32 %v1016_v56  ;;  %v1674_v8 = vpop.eup %1673  ;;  %v1048_v4 = vmul.f32 1.442695, %v998_v0 }
 0x131   : > { %v2448_v30 = vpop.xlane.xlu1 %832  ;;  %v2452_v41 = vpop.xlane.xlu0 %829  ;;  %1689 = vlog2.f32 %v1080_v61  ;;  %v1022_v28 = vmul.f32 1.442695, %v985_v12  ;;  %v1086_v55 = vadd.f32 1.0, %v1674_v8  ;;  %v967_v11 = vand.u32 2147483647, %v1575_v20 }
 0x132   : > { %v993_v5 = vsub.f32 0.0, %v961_v2  ;;  %v1676_v25 = vpop.eup %1675  ;;  %1691 = vlog2.f32 %v1092_v9  ;;  %v2801_v34 = vclamps-f32 %v2452_v41, 10.0  ;;  %v2523_v50 = vmax.f32 %v1559_v14, 0.0 }
 0x133   : > { %v1678_v35 = vpop.eup %1677  ;;  %1693 = vpow2.f32 %v1034_v32  ;;  %v1125_v37 = vmul.f32 0.6931472, %v1676_v25  ;;  %v999_v61 = vsub.f32 0.0, %v967_v11  ;;  %v2798_v62 = vclamps-f32 %v2448_v30, 10.0 }
 0x134   : > { %v1680_v44 = vpop.eup %1679  ;;  %1695 = vpow2.f32 %v1018_v19  ;;  %v1038_v52 = vmul.f32 1.442695, %v993_v5  ;;  %v1109_v40 = vmul.f32 0.6931472, %v1678_v35  ;;  %v972_v53 = vand.u32 2147483647, %v2801_v34 }
 0x135   : > { %v2461_v29 = vpop.xlane.xlu1 %799  ;;  %v2467_v3 = vpop.xlane.xlu0 %775  ;;  %1697 = vpow2.f32 %v1048_v4  ;;  %v1077_v47 = vadd.f32 1.0, %v1680_v44  ;;  %v2530_v2 = vadd.f32 %v1125_v37, %v924_v63  ;;  %v2534_v59 = vmax.f32 %v1574_v24, 0.0 }
 0x136   : > { %v1562_v31 = vclamps-f32 %v2467_v3, 10.0  ;;  %v1682_v58 = vpop.eup %1681  ;;  %v1570_v23 = vclamps-f32 %v2461_v29, 10.0  ;;  %1699 = vpow2.f32 %v1022_v28  ;;  %v2536_v14 = vadd.f32 %v1109_v40, %v916_v7 }
 0x137   : > { %v1684_v46 = vpop.eup %1683  ;;  %1701 = vlog2.f32 %v1086_v55  ;;  %v1093_v57 = vadd.f32 1.0, %v1682_v58  ;;  %v1004_v12 = vsub.f32 0.0, %v972_v53  ;;  %v2541_v13 = vmax.f32 %v1561_v26, 0.0 }
 0x138   : > { %v954_v45 = vand.u32 2147483647, %v1562_v31  ;;  %v962_v51 = vand.u32 2147483647, %v1570_v23  ;;  %1703 = vpow2.f32 %v1038_v52  ;;  %v1133_v9 = vmul.f32 0.6931472, %v1684_v46 }
 0x139   : > { %v2489_v42 = vpop.xlane.xlu1 %835  ;;  %v2515_v43 = vpop.xlane.xlu0 %817  ;;  %1705 = vlog2.f32 %v1077_v47  ;;  %v1050_v24 = vmul.f32 1.442695, %v999_v61  ;;  %v973_v63 = vand.u32 2147483647, %v2798_v62  ;;  %v2549_v44 = vmax.f32 %v1569_v49, 0.0 }
 0x13a   : > { %v986_v6 = vsub.f32 0.0, %v954_v45  ;;  %v1686_v56 = vpop.eup %1685  ;;  %v994_v60 = vsub.f32 0.0, %v962_v51  ;;  %v2803_v4 = vclamps-f32 %v2515_v43, 10.0  ;;  %1707 = vlog2.f32 %v1093_v57 }
 0x13b   : > { %v1688_v0 = vpop.eup %1687  ;;  %v1127_v19 = vmul.f32 0.6931472, %v1686_v56  ;;  %v1273_v1 = vrot.slane %v2530_v2, %v2197_v10  ;;  %v2556_v26 = vadd.f32 %v1133_v9, %v2473_v18  ;;  %v1060_v45 = vmul.f32 1.442695, %v1004_v12 }
 0x13c   : > { %v1690_v21 = vpop.eup %1689  ;;  %v1024_v32 = vmul.f32 1.442695, %v986_v6  ;;  %v1040_v8 = vmul.f32 1.442695, %v994_v60  ;;  %v1078_v35 = vadd.f32 1.0, %v1688_v0  ;;  %v1241_v37 = vrot.slane %v2536_v14, %v2197_v10 }
 0x13d   : > { %v2527_v54 = vpop.xlane.xlu1 %802  ;;  %v1692_v5 = vpop.eup %1691  ;;  %v1117_v28 = vmul.f32 0.6931472, %v1690_v21  ;;  %v1181_v15 = vadd.f32 %v1127_v19, %v2483_v22  ;;  %v968_v49 = vand.u32 2147483647, %v2803_v4  ;;  %v1005_v6 = vsub.f32 0.0, %v973_v63 }
 0x13e   : > { %v2545_v7 = vpop.xlane.xlu0 %778  ;;  %v1694_v25 = vpop.eup %1693  ;;  %1709 = vpow2.f32 %v1040_v8  ;;  %v1571_v52 = vclamps-f32 %v2527_v54, 10.0  ;;  %v2796_v18 = vclamps-f32 %v2489_v42, 10.0  ;;  %v2565_v46 = vmul.f32 0.6931472, %v1692_v5 }
 0x13f   : > { %v1696_v11 = vpop.eup %1695  ;;  %1711 = vpow2.f32 %v1024_v32  ;;  %v1087_v53 = vadd.f32 1.0, %v1694_v25  ;;  %v2568_v47 = vadd.f32 %v1117_v28, %v2487_v33  ;;  %v1289_v22 = vrot.slane %v2556_v26, %v2197_v10 }
 0x140   : > { %v1698_v58 = vpop.eup %1697  ;;  %1713 = vpow2.f32 %v1050_v24  ;;  %v1079_v51 = vadd.f32 1.0, %v1696_v11  ;;  %v2574_v61 = vmax.f32 %v1562_v31, 0.0  ;;  %v1277_v60 = vrot.slane %v1181_v15, %v2197_v10 }
 0x141   : > { %v2551_v55 = vpop.xlane.xlu1 %838  ;;  %v1700_v40 = vpop.eup %1699  ;;  %1715 = vlog2.f32 %v1078_v35  ;;  %v1094_v57 = vadd.f32 1.0, %v1698_v58  ;;  %v1000_v33 = vsub.f32 0.0, %v968_v49  ;;  %v963_v9 = vand.u32 2147483647, %v1571_v52 }
 0x142   : > { %v1702_v56 = vpop.eup %1701  ;;  %1717 = vpow2.f32 %v1060_v45  ;;  %v2576_v0 = vpop.xlane.xlu0 %820  ;;  %v1081_v21 = vadd.f32 1.0, %v1700_v40  ;;  %v1062_v32 = vmul.f32 1.442695, %v1005_v6  ;;  %v974_v19 = vand.u32 2147483647, %v2796_v18 }
 0x143   : > { %v1704_v2 = vpop.eup %1703  ;;  %1719 = vlog2.f32 %v1087_v53  ;;  %v1563_v3 = vclamps-f32 %v2545_v7, 10.0  ;;  %v1257_v8 = vrot.slane %v2568_v47, %v2197_v10  ;;  %v995_v5 = vsub.f32 0.0, %v963_v9 }
 0x144   : > { %v1706_v31 = vpop.eup %1705  ;;  %1721 = vlog2.f32 %v1079_v51  ;;  %v2795_v24 = vclamps-f32 %v2551_v55, 10.0  ;;  %v1129_v25 = vmul.f32 0.6931472, %v1702_v56  ;;  %v1089_v28 = vadd.f32 1.0, %v1704_v2 }
 0x145   : > { %v2581_v12 = vpop.xlane.xlu1 %841  ;;  %v1708_v63 = vpop.eup %1707  ;;  %1723 = vlog2.f32 %v1094_v57  ;;  %v955_v35 = vand.u32 2147483647, %v1563_v3  ;;  %v2592_v45 = vsel %vm1366_vm2, %v1277_v60, %v1273_v1  ;;  %v1052_v58 = vmul.f32 1.442695, %v1000_v33 }
 0x146   : > { %1725 = vlog2.f32 %v1081_v21  ;;  %v1042_v15 = vmul.f32 1.442695, %v995_v5  ;;  %v1111_v40 = vmul.f32 0.6931472, %v1706_v31  ;;  %v1006_v53 = vsub.f32 0.0, %v974_v19  ;;  %v2594_v51 = vpop.xlane.xlu0 %823 }
 0x147   : > { %1727 = vpow2.f32 %v1062_v32  ;;  %v987_v6 = vsub.f32 0.0, %v955_v35  ;;  %v975_v57 = vand.u32 2147483647, %v2795_v24  ;;  %v2800_v2 = vclamps-f32 %v2576_v0, 10.0 }
 0x148   : > { %v1710_v11 = vpop.eup %1709  ;;  %1729 = vpow2.f32 %v1042_v15  ;;  %v1182_v21 = vadd.f32 %v1129_v25, %v2493_v27  ;;  %v2604_v33 = vmax.f32 %v1570_v23, 0.0  ;;  %v1143_v19 = vmul.f32 0.6931472, %v1708_v63 }
 0x149   : > { %v1712_v49 = vpop.eup %1711  ;;  %v1090_v56 = vadd.f32 1.0, %v1710_v11  ;;  %v2599_v1 = vpop.xlane.xlu1 %844  ;;  %1731 = vlog2.f32 %v1089_v28  ;;  %v1026_v9 = vmul.f32 1.442695, %v987_v6  ;;  %v1007_v5 = vsub.f32 0.0, %v975_v57 }
 0x14a   : > { %v1714_v60 = vpop.eup %1713  ;;  %v1082_v31 = vadd.f32 1.0, %v1712_v49  ;;  %1733 = vpow2.f32 %v1052_v58  ;;  %v1064_v11 = vmul.f32 1.442695, %v1006_v53  ;;  %v969_v15 = vand.u32 2147483647, %v2800_v2  ;;  %v2615_v53 = vpop.xlane.xlu0 %826 }
 0x14b   : > { %v1716_v32 = vpop.eup %1715  ;;  %1735 = vpow2.f32 %v1026_v9  ;;  %v2797_v24 = vclamps-f32 %v2581_v12, 10.0  ;;  %v1066_v27 = vmul.f32 1.442695, %v1007_v5  ;;  %v2799_v29 = vclamps-f32 %v2594_v51, 10.0 }
 0x14c   : > { %v1718_v35 = vpop.eup %1717  ;;  %1737 = vlog2.f32 %v1090_v56  ;;  %v2802_v23 = vclamps-f32 %v2599_v1, 10.0  ;;  %v1281_v63 = vrot.slane %v1182_v21, %v2197_v10  ;;  %v1173_v28 = vadd.f32 %v1111_v40, %v2498_v38 }
 0x14d   : > { %v1720_v25 = vpop.eup %1719  ;;  %v1001_v58 = vsub.f32 0.0, %v969_v15  ;;  %v976_v49 = vand.u32 2147483647, %v2797_v24  ;;  %v1113_v57 = vmul.f32 0.6931472, %v1716_v32  ;;  %v1095_v9 = vadd.f32 1.0, %v1714_v60  ;;  %v2619_v5 = vpop.xlane.xlu1 %850 }
 0x14e   : > { %v1722_v6 = vpop.eup %1721  ;;  %1739 = vlog2.f32 %v1082_v31  ;;  %v970_v56 = vand.u32 2147483647, %v2799_v29  ;;  %v977_v40 = vand.u32 2147483647, %v2802_v23  ;;  %v1131_v24 = vmul.f32 0.6931472, %v1720_v25 }
 0x14f   : > { %v2621_v18 = vpop.eup %1723  ;;  %1741 = vpow2.f32 %v1064_v11  ;;  %v1054_v21 = vmul.f32 1.442695, %v1001_v58  ;;  %v1008_v38 = vsub.f32 0.0, %v976_v49  ;;  %v1579_v60 = vclamps-f32 %v2615_v53, 10.0 }
 0x150   : > { %v1726_v15 = vpop.eup %1725  ;;  %1743 = vpow2.f32 %v1066_v27  ;;  %v1002_v62 = vsub.f32 0.0, %v970_v56  ;;  %v1009_v29 = vsub.f32 0.0, %v977_v40  ;;  %v1587_v2 = vclamps-f32 %v2619_v5, 10.0 }
 0x151   : > { %v1728_v32 = vpop.eup %1727  ;;  %1745 = vpow2.f32 %v1054_v21  ;;  %v1068_v31 = vmul.f32 1.442695, %v1008_v38  ;;  %v1245_v11 = vrot.slane %v1173_v28, %v2197_v10  ;;  %v2629_v58 = vadd.f32 %v1143_v19, %v2502_v36  ;;  %v2638_v36 = vpop.xlane.xlu0 %847 }
 0x152   : > { %v1730_v34 = vpop.eup %1729  ;;  %1747 = vlog2.f32 %v1095_v9  ;;  %v1056_v49 = vmul.f32 1.442695, %v1002_v62  ;;  %v2633_v27 = vsel %vm1368_vm3, %v1281_v63, %v2592_v45  ;;  %v1070_v56 = vmul.f32 1.442695, %v1009_v29 }
 0x153   : > { %v1732_v23 = vpop.eup %1731  ;;  %v1091_v25 = vadd.f32 1.0, %v1730_v34  ;;  %1749 = vpow2.f32 %v1068_v31  ;;  %v1174_v38 = vadd.f32 %v1113_v57, %v2506_v39  ;;  %v1115_v40 = vmul.f32 0.6931472, %v1722_v6 }
 0x154   : > { %v1734_v21 = vpop.eup %1733  ;;  %v1100_v4 = vadd.f32 1.0, %v1718_v35  ;;  %v971_v28 = vand.u32 2147483647, %v1579_v60  ;;  %v2641_v62 = vadd.f32 %v1131_v24, %v2519_v48  ;;  %v1119_v9 = vmul.f32 0.6931472, %v1726_v15 }
 0x155   : > { %v1736_v19 = vpop.eup %1735  ;;  %1751 = vlog2.f32 %v1091_v25  ;;  %v979_v34 = vand.u32 2147483647, %v1587_v2  ;;  %v1135_v29 = vmul.f32 0.6931472, %v1732_v23  ;;  %v1096_v63 = vadd.f32 1.0, %v1734_v21 }
 0x156   : > { %v1738_v45 = vpop.eup %1737  ;;  %v1083_v39 = vadd.f32 1.0, %v1736_v19  ;;  %1753 = vpow2.f32 %v1056_v49  ;;  %v1003_v35 = vsub.f32 0.0, %v971_v28  ;;  %v1586_v57 = vclamps-f32 %v2638_v36, 10.0 }
 0x157   : > { %1755 = vpow2.f32 %v1070_v56  ;;  %v1011_v6 = vsub.f32 0.0, %v979_v34  ;;  %v1367_v48 = vsel %vm1366_vm2, %v1245_v11, %v1241_v37  ;;  %v1249_v24 = vrot.slane %v1174_v38, %v2197_v10 }
 0x158   : > { %v1740_v31 = vpop.eup %1739  ;;  %1757 = vlog2.f32 %v1083_v39  ;;  %v1058_v15 = vmul.f32 1.442695, %v1003_v35  ;;  %v1175_v49 = vadd.f32 %v1115_v40, %v2523_v50  ;;  %v1137_v25 = vmul.f32 0.6931472, %v1738_v45 }
 0x159   : > { %v1742_v23 = vpop.eup %1741  ;;  %1759 = vlog2.f32 %v1100_v4  ;;  %v1074_v56 = vmul.f32 1.442695, %v1011_v6  ;;  %v1285_v28 = vrot.slane %v2641_v62, %v2197_v10  ;;  %v1101_v19 = vadd.f32 1.0, %v1728_v32 }
 0x15a   : > { %v1744_v21 = vpop.eup %1743  ;;  %1761 = vpow2.f32 %v1058_v15  ;;  %v978_v14 = vand.u32 2147483647, %v1586_v57  ;;  %v1177_v11 = vadd.f32 %v1119_v9, %v2541_v13  ;;  %v1185_v38 = vadd.f32 %v1135_v29, %v2549_v44 }
 0x15b   : > { %v1746_v37 = vpop.eup %1745  ;;  %v1121_v34 = vmul.f32 0.6931472, %v1740_v31  ;;  %1763 = vlog2.f32 %v1096_v63  ;;  %v1102_v4 = vadd.f32 1.0, %v1742_v23  ;;  %v1369_v45 = vsel %vm1368_vm3, %v1249_v24, %v1367_v48 }
 0x15c   : > { %v1748_v50 = vpop.eup %1747  ;;  %v1097_v40 = vadd.f32 1.0, %v1746_v37  ;;  %1765 = vpow2.f32 %v1074_v56  ;;  %v1010_v62 = vsub.f32 0.0, %v978_v14  ;;  %v1253_v39 = vrot.slane %v1175_v49, %v2197_v10 }
 0x15d   : > { %v1750_v32 = vpop.eup %1749  ;;  %v1145_v35 = vmul.f32 0.6931472, %v2621_v18  ;;  %v1186_v13 = vadd.f32 %v1137_v25, %v2604_v33  ;;  %v931_v44 = vmax.f32 %v1571_v52, 0.0  ;;  %v1103_v9 = vadd.f32 1.0, %v1744_v21 }
 0x15e   : > { %1767 = vlog2.f32 %v1097_v40  ;;  %v1072_v29 = vmul.f32 1.442695, %v1010_v62  ;;  %v1261_v6 = vrot.slane %v1177_v11, %v2197_v10  ;;  %v1293_v31 = vrot.slane %v1185_v38, %v2197_v10 }
 0x15f   : > { %v1752_v63 = vpop.eup %1751  ;;  %1769 = vlog2.f32 %v1101_v19  ;;  %v1178_v48 = vadd.f32 %v1121_v34, %v2574_v61  ;;  %v1104_v18 = vadd.f32 1.0, %v1750_v32  ;;  %v1382_v33 = vsel %vm1370_vm4, %v1285_v28, %v2633_v27 }
 0x160   : > { %v1754_v24 = vpop.eup %1753  ;;  %1771 = vlog2.f32 %v1102_v4  ;;  %v1139_v15 = vmul.f32 0.6931472, %v1752_v63  ;;  %v1297_v52 = vrot.slane %v1186_v13, %v2197_v10  ;;  %v1371_v49 = vsel %vm1370_vm4, %v1253_v39, %v1369_v45 }
 0x161   : > { %v1756_v54 = vpop.eup %1755  ;;  %v1098_v23 = vadd.f32 1.0, %v1754_v24  ;;  %1773 = vpow2.f32 %v1072_v29  ;;  %v923_v21 = vmax.f32 %v1563_v3, 0.0  ;;  %v1265_v14 = vrot.slane %v1178_v48, %v2197_v10 }
 0x162   : > { %v1758_v25 = vpop.eup %1757  ;;  %v1187_v56 = vadd.f32 %v1139_v15, %v931_v44  ;;  %1775 = vlog2.f32 %v1103_v9  ;;  %v1105_v61 = vadd.f32 1.0, %v1756_v54  ;;  %v1383_v27 = vsel %vm1372_vm5, %v1289_v22, %v1382_v33 }
 0x163   : > { %v1760_v19 = vpop.eup %1759  ;;  %v1123_v37 = vmul.f32 0.6931472, %v1758_v25  ;;  %1777 = vlog2.f32 %v1098_v23  ;;  %v1384_v38 = vsel %vm1374_vm7, %v1293_v31, %v1383_v27  ;;  %v1373_v7 = vsel %vm1372_vm5, %v1257_v8, %v1371_v49 }
 0x164   : > { %v1762_v28 = vpop.eup %1761  ;;  %1779 = vlog2.f32 %v1104_v18  ;;  %v1301_v11 = vrot.slane %v1187_v56, %v2197_v10  ;;  %v1385_v40 = vsel %vm1376_vm6, %v1297_v52, %v1384_v38  ;;  %v1188_v22 = vadd.f32 %v2565_v46, %v2477_v17 }
 0x165   : > { %v1764_v3 = vpop.eup %1763  ;;  %v1179_v34 = vadd.f32 %v1123_v37, %v923_v21  ;;  %1781 = vlog2.f32 %v1105_v61  ;;  %v1099_v4 = vadd.f32 1.0, %v1762_v28  ;;  %v1190_v62 = vadd.f32 %v1145_v35, %v2534_v59 }
 0x166   : > { %v1766_v26 = vpop.eup %1765  ;;  %v1386_v32 = vsel %vm1378_vm8, %v1301_v11, %v1385_v40  ;;  %v1375_v45 = vsel %vm1374_vm7, %v1261_v6, %v1373_v7  ;;  %v1147_v44 = vmul.f32 0.6931472, %v1748_v50  ;;  %v1309_v17 = vrot.slane %v2629_v58, %v2197_v10 }
 0x167   : > { %1783 = vlog2.f32 %v1099_v4  ;;  %v1107_v47 = vadd.f32 1.0, %v1766_v26  ;;  %v1409_v8 = vsel %vm1405_vm9, %v1386_v32, 0.0  ;;  %v1269_v39 = vrot.slane %v1179_v34, %v2197_v10 }
 0x168   : > { %v1768_v13 = vpop.eup %1767  ;;  %1410 = vadd.xlane.f32.xlu1 %v1409_v8  ;;  %v1377_v9 = vsel %vm1376_vm6, %v1265_v14, %v1375_v45  ;;  %v1149_v59 = vmul.f32 0.6931472, %v1764_v3  ;;  %v935_v63 = vmax.f32 %v1575_v20, 0.0  ;;  %v1305_v50 = vrot.slane %v1188_v22, %v2197_v10 }
 0x169   : > { %v1770_v29 = vpop.eup %1769  ;;  %1785 = vlog2.f32 %v1107_v47  ;;  %v1379_v46 = vsel %vm1378_vm8, %v1269_v39, %v1377_v9  ;;  %v1151_v6 = vmul.f32 0.6931472, %v1768_v13  ;;  %v1313_v24 = vrot.slane %v1190_v62, %v2197_v10 }
 0x16a   : > { %v1772_v35 = vpop.eup %1771  ;;  %v1406_v31 = vsel %vm1405_vm9, %v1379_v46, 0.0  ;;  %v2812_v15 = vclamps-f32 %v2515_v43, 10.0  ;;  %v1191_v33 = vadd.f32 %v1147_v44, %v935_v63  ;;  %v2813_v54 = vclamps-f32 %v2452_v41, 10.0 }
 0x16b   : > { %v1774_v48 = vpop.eup %1773  ;;  %1407 = vadd.xlane.f32.xlu0 %v1406_v31  ;;  %v2814_v16 = vclamps-f32 %v2576_v0, 10.0  ;;  %v1387_v25 = vsel %vm1366_vm2, %v1309_v17, %v1305_v50  ;;  %v1157_v56 = vmul.f32 0.6931472, %v1760_v19  ;;  %v1159_v21 = vmul.f32 0.6931472, %v1770_v29 }
 0x16c   : > { %v936_v18 = vmax.f32 %v2812_v15, 0.0  ;;  %v1776_v58 = vpop.eup %1775  ;;  %v940_v52 = vmax.f32 %v2813_v54, 0.0  ;;  %v1106_v23 = vadd.f32 1.0, %v1774_v48  ;;  %v2815_v43 = vclamps-f32 %v2594_v51, 10.0 }
 0x16d   : > { %v937_v20 = vmax.f32 %v2814_v16, 0.0  ;;  %v1778_v49 = vpop.eup %1777  ;;  %v1388_v41 = vsel %vm1368_vm3, %v1313_v24, %v1387_v25  ;;  %v2816_v0 = vclamps-f32 %v2448_v30, 10.0  ;;  %v2817_v7 = vclamps-f32 %v2489_v42, 10.0 }
 0x16e   : > { %v1192_v61 = vadd.f32 %v1149_v59, %v936_v18  ;;  %v1780_v14 = vpop.eup %1779  ;;  %v938_v27 = vmax.f32 %v2815_v43, 0.0  ;;  %v1153_v28 = vmul.f32 0.6931472, %v1778_v49  ;;  %1787 = vlog2.f32 %v1106_v23 }
 0x16f   : > { %v1193_v37 = vadd.f32 %v1151_v6, %v937_v20  ;;  %v1782_v11 = vpop.eup %1781  ;;  %v941_v38 = vmax.f32 %v2816_v0, 0.0  ;;  %v942_v3 = vmax.f32 %v2817_v7, 0.0  ;;  %v1161_v34 = vmul.f32 0.6931472, %v1772_v35 }
 0x170   : > { %v1317_v19 = vrot.slane %v1191_v33, %v2197_v10  ;;  %v2818_v4 = vclamps-f32 %v2551_v55, 10.0  ;;  %v1163_v26 = vmul.f32 0.6931472, %v1776_v58  ;;  %v1194_v51 = vadd.f32 %v1153_v28, %v938_v27  ;;  %v308_v28 = vpop.xlane.xlu0 %307 }
 0x171   : > { %v1784_v22 = vpop.eup %1783  ;;  %v1196_v62 = vadd.f32 %v1157_v56, %v940_v52  ;;  %v1197_v32 = vadd.f32 %v1159_v21, %v941_v38  ;;  %v1321_v45 = vrot.slane %v1192_v61, %v2197_v10  ;;  %v1165_v47 = vmul.f32 0.6931472, %v1780_v14 }
 0x172   : > { %v943_v40 = vmax.f32 %v2818_v4, 0.0  ;;  %v1325_v30 = vrot.slane %v1193_v37, %v2197_v10  ;;  %v1167_v8 = vmul.f32 0.6931472, %v1782_v11  ;;  %v939_v42 = vmax.f32 %v1579_v60, 0.0  ;;  %v310_v11 = vpop.xlane.xlu1 %309 }
 0x173   : > { %v1155_v39 = vmul.f32 0.6931472, %v1784_v22  ;;  %v1786_v13 = vpop.eup %1785  ;;  %v1198_v44 = vadd.f32 %v1161_v34, %v942_v3  ;;  %v2819_v55 = vclamps-f32 %v2581_v12, 10.0  ;;  %v1329_v29 = vrot.slane %v1194_v51, %v2197_v10 }
 0x174   : > { %v2820_v17 = vclamps-f32 %v2599_v1, 10.0  ;;  %v1199_v46 = vadd.f32 %v1163_v26, %v943_v40  ;;  %v1171_v63 = vmul.f32 0.6931472, %v1786_v13  ;;  %v1389_v6 = vsel %vm1370_vm4, %v1317_v19, %v1388_v41  ;;  %v312_v0 = vpop.xlane.xlu0 %311 }
 0x175   : > { %v944_v9 = vmax.f32 %v2819_v55, 0.0  ;;  %v1195_v35 = vadd.f32 %v1155_v39, %v939_v42  ;;  %v1337_v31 = vrot.slane %v1196_v62, %v2197_v10  ;;  %v1341_v53 = vrot.slane %v1197_v32, %v2197_v10 }
 0x176   : > { %v945_v59 = vmax.f32 %v2820_v17, 0.0  ;;  %v1390_v48 = vsel %vm1372_vm5, %v1321_v45, %v1389_v6  ;;  %v947_v12 = vmax.f32 %v1587_v2, 0.0  ;;  %v1345_v15 = vrot.slane %v1198_v44, %v2197_v10  ;;  %v314_v34 = vpop.xlane.xlu1 %313 }
 0x177   : > { %v1200_v60 = vadd.f32 %v1165_v47, %v944_v9  ;;  %v1333_v24 = vrot.slane %v1195_v35, %v2197_v10  ;;  %v1391_v1 = vsel %vm1374_vm7, %v1325_v30, %v1390_v48  ;;  %v1349_v33 = vrot.slane %v1199_v46, %v2197_v10 }
 0x178   : > { %v1201_v50 = vadd.f32 %v1167_v8, %v945_v59  ;;  %v1392_v18 = vsel %vm1376_vm6, %v1329_v29, %v1391_v1  ;;  %v1788_v58 = vpop.eup %1787  ;;  %v1203_v54 = vadd.f32 %v1171_v63, %v947_v12  ;;  %v946_v5 = vmax.f32 %v1586_v57, 0.0 }
 0x179   : > { %v1393_v52 = vsel %vm1378_vm8, %v1333_v24, %v1392_v18  ;;  %v1353_v16 = vrot.slane %v1200_v60, %v2197_v10  ;;  %v1169_v2 = vmul.f32 0.6931472, %v1788_v58  ;;  %v1394_v23 = vsel %vm1366_vm2, %v1341_v53, %v1337_v31 }
 0x17a   : > { %v1412_v20 = vsel %vm1405_vm9, %v1393_v52, 0.0  ;;  %v1357_v49 = vrot.slane %v1201_v50, %v2197_v10  ;;  %v1395_v25 = vsel %vm1368_vm3, %v1345_v15, %v1394_v23  ;;  %v1365_v21 = vrot.slane %v1203_v54, %v2197_v10 }
 0x17b   : > { %1413 = vadd.xlane.f32.xlu0 %v1412_v20  ;;  %v1202_v56 = vadd.f32 %v1169_v2, %v946_v5  ;;  %v1396_v61 = vsel %vm1370_vm4, %v1349_v33, %v1395_v25  ;;  %v1552_v41 = vclamps-f32 %v308_v28, 10.0  ;;  %v1553_v38 = vclamps-f32 %v310_v11, 10.0  ;;  %v1418_v28 = vld [vmem:[#allocation8] sm:$0x1] }
 0x17c   : > { %v1397_v36 = vsel %vm1372_vm5, %v1353_v16, %v1396_v61  ;;  %v1554_v7 = vclamps-f32 %v312_v0, 10.0  ;;  %v1555_v4 = vclamps-f32 %v314_v34, 10.0 }
 0x17d   : > { %v1361_v14 = vrot.slane %v1202_v56, %v2197_v10  ;;  %v1398_v57 = vsel %vm1374_vm7, %v1357_v49, %v1397_v36  ;;  %v323_v3 = vsub.f32 0.0, %v1552_v41  ;;  %v324_v10 = vsub.f32 0.0, %v1553_v38 }
 0x17e   : > { %v325_v19 = vsub.f32 0.0, %v1554_v7  ;;  %v326_v22 = vsub.f32 0.0, %v1555_v4 }
 0x17f   : > { %v1399_v37 = vsel %vm1376_vm6, %v1361_v14, %v1398_v57  ;;  %v331_v40 = vand.u32 2147483647, %v323_v3  ;;  %v332_v26 = vand.u32 2147483647, %v324_v10  ;;  %v327_v53 = vmax.f32 %v323_v3, 0.0 }
 0x180   : > { %v1400_v43 = vsel %vm1378_vm8, %v1365_v21, %v1399_v37  ;;  %v333_v51 = vand.u32 2147483647, %v325_v19  ;;  %v334_v47 = vand.u32 2147483647, %v326_v22  ;;  %v328_v60 = vmax.f32 %v324_v10, 0.0 }
 0x181   : > { %v1415_v27 = vsel %vm1405_vm9, %v1400_v43, 0.0  ;;  %v335_v62 = vsub.f32 0.0, %v331_v40  ;;  %v336_v32 = vsub.f32 0.0, %v332_v26  ;;  %v329_v24 = vmax.f32 %v325_v19, 0.0 }
 0x182   : > { %1416 = vadd.xlane.f32.xlu1 %v1415_v27  ;;  %v337_v45 = vsub.f32 0.0, %v333_v51  ;;  %v338_v39 = vsub.f32 0.0, %v334_v47  ;;  %v330_v54 = vmax.f32 %v326_v22, 0.0 }
 0x183   : > { %v339_v30 = vmul.f32 1.442695, %v335_v62  ;;  %v341_v8 = vmul.f32 1.442695, %v336_v32 }
 0x184   : > { %v343_v42 = vmul.f32 1.442695, %v337_v45  ;;  %v345_v13 = vmul.f32 1.442695, %v338_v39 }
 0x185   : > { %1789 = vpow2.f32 %v339_v30 }
 0x186   : > { %1791 = vpow2.f32 %v341_v8 }
 0x187   : > { %1793 = vpow2.f32 %v343_v42 }
 0x188   : > { %1795 = vpow2.f32 %v345_v13 }
 0x18f   : > { %v1790_v44 = vpop.eup %1789 }
 0x190   : > { %v1792_v55 = vpop.eup %1791  ;;  %v347_v29 = vadd.f32 1.0, %v1790_v44 }
 0x191   : > { %v1794_v9 = vpop.eup %1793  ;;  %v348_v17 = vadd.f32 1.0, %v1792_v55 }
 0x192   : > { %v349_v59 = vadd.f32 1.0, %v1794_v9  ;;  %v1796_v46 = vpop.eup %1795  ;;  %1797 = vlog2.f32 %v347_v29 }
 0x193   : > { %1799 = vlog2.f32 %v348_v17  ;;  %v350_v35 = vadd.f32 1.0, %v1796_v46 }
 0x194   : > { %1801 = vlog2.f32 %v349_v59 }
 0x195   : > { %1803 = vlog2.f32 %v350_v35 }
 0x19c   : > { %v1798_v63 = vpop.eup %1797 }
 0x19d   : > { %v1800_v6 = vpop.eup %1799  ;;  %v352_v50 = vmul.f32 0.6931472, %v1798_v63 }
 0x19e   : > { %v1802_v31 = vpop.eup %1801  ;;  %v354_v48 = vmul.f32 0.6931472, %v1800_v6 }
 0x19f   : > { %v356_v1 = vmul.f32 0.6931472, %v1802_v31  ;;  %v1804_v15 = vpop.eup %1803  ;;  %v359_v33 = vadd.f32 %v352_v50, %v327_v53 }
 0x1a0   : > { %v360_v58 = vadd.f32 %v354_v48, %v328_v60  ;;  %v358_v20 = vmul.f32 0.6931472, %v1804_v15 }
 0x1a1   : > { %v361_v2 = vadd.f32 %v356_v1, %v329_v24 }
 0x1a2   : > { %v362_v25 = vadd.f32 %v358_v20, %v330_v54 }
 0x1f5   : > { %v1411_v18 = vpop.xlane.xlu1 %1410 }
 0x1f6   : > { %v1420_v16 = vadd.f32 %v1411_v18, %v360_v58 }
 0x1f8   : > { %v1408_v12 = vpop.xlane.xlu0 %1407 }
 0x1f9   : > { %v1419_v5 = vadd.f32 %v1408_v12, %v359_v33 }
 0x1fb   : > { %v1423_v49 = vadd.f32 %v1420_v16, %v1419_v5 }
 0x208   : > { %v1414_v52 = vpop.xlane.xlu0 %1413 }
 0x209   : > { %v1421_v23 = vadd.f32 %v1414_v52, %v361_v2 }
 0x20b   : > { %v1424_v21 = vadd.f32 %v1423_v49, %v1421_v23 }
 0x20f   : > { %v1417_v56 = vpop.xlane.xlu1 %1416 }
 0x210   : > { %v1422_v61 = vadd.f32 %v1417_v56, %v362_v25 }
 0x212   : > { %v1425_v14 = vadd.f32 %v1424_v21, %v1422_v61 }
 0x214   : > { %v1426_v36 = vrot.slane %v1425_v14, 4 }
 0x216   : > { %v1427_v57 = vadd.f32 %v1426_v36, %v1425_v14 }
 0x218   : > { %v1428_v37 = vrot.slane %v1427_v57, 2 }
 0x21a   : > { %v1429_v43 = vadd.f32 %v1428_v37, %v1427_v57 }
 0x21c   : > { %v1430_v27 = vrot.slane %v1429_v43, 1 }
 0x21e   : > { %v1431_v11 = vadd.f32 %v1430_v27, %v1429_v43 }
 0x220   : > { %v1432_v41 = vadd.f32 %v1431_v11, %v1418_v28 }
 0x222   : > { %1434 = vst.msk [vmem:[#allocation8] sm:$0x1] %vm1433_vm10, %v1432_v41 }
 0x223   : > { %1908 = shalt.err (!%p1905_p10)
}
 0x224   : > { %s1909_s10 = scalar_lea.hbm %s2793_s3, 16 }
 0x225   : > { %p1910_p4 = scmp.ne.s32.totalorder %s2793_s3, %s1909_s10  ;;  %p1915_p12 = scmp.lt.u32.totalorder %s1909_s10, %s2793_s3 }
 0x227   : > { %p1911_p13 = pnand %p1910_p4, %p1616_p2 }
 0x229   : > { %p1912_p1 = pneg %p1911_p13 }
 0x22b   : > { %p1917_p11 = pnand %p1915_p12, %p1912_p1 }
 0x22d   : > { %1920 = shalt.err (!%p1917_p11)
}
 0x22e   : > { %1602 = dma.vmem_to_hbm [thread:$0]  (%p1616_p2), %s1443_s23, 16, %s2793_s3, [#allocation4]  }
 0x22f   : > { %1946 = dma.done.wait (%p1616_p2), [#allocation4], 16  }
 0x230   : > { %1948 = vsyncadd (%p1616_p2), [#allocation4], 4294967280 }
 0x231 PF: > { %p17_p8 = scmp.ge.s32.totalorder %s2017_s17, 6   ;;  %s2821_s12 = smov %s1955_s13 }
 0x232   : > { %s2822_s13 = smov %s1959_s14  ;;  %s2823_s14 = smov %s2027_s20 }
 0x233   : > { %s2824_s15 = smov %s2017_s17  ;;  %19 = sbr.rel (!%p17_p8) target bundleno = 6 (0x6), region = 97 }
 0x23a   :  { %1455 = vsyncpa [#allocation3], 1 }
 0x23b   :  { %1457 = vsyncpa [#allocation3 + $0x1], 1 }
 0x23c   :  { %1458 = vsyncpa [#allocation6], 1 }
 0x23d   :  { %1460 = vsyncpa [#allocation6 + $0x1], 1 }
 0x23e   :  { %1461 = vsyncpa [#allocation4], 1 }
 0x23f   :  { %1463 = vsyncpa [#allocation4 + $0x1], 1 }

</bundles_post_ra>
